<compile_context>
chip_gen: v7x
topology: tpu7x:2x2x1
jax: 0.10.0
libtpu: 0.0.40
codegen_flags: <defaults>
</compile_context>

<pallas_src>
import functools

import jax
import jax.numpy as jnp
from jax import lax
from jax.experimental import pallas as pl
from jax.experimental.pallas import tpu as pltpu


# ----------------------------------------------------------------------------
# Fused kernel: z_to_h + n_layers GRU (wavefront) + h_to_char + CE loss + argmax
# ----------------------------------------------------------------------------
def fused_decoder_kernel(n_layers, T, Bp, H, pad_id, *refs):
    n_extra = n_layers - 1
    n_in = 11 + 4 * n_extra + 2
    in_refs = refs[:n_in]
    loss_ref = refs[n_in]
    xhat_ref = refs[n_in + 1]
    hout_ref = refs[n_in + 2]          # VMEM scratch (T*Bp, H) f32

    (x_ref, valid_ref, tgt_ref, z_ref, wzh_ref, bzh_ref,
     wih0x_ref, wih0z_ref, bih0_ref, whh0_ref, bhn0_ref) = in_refs[:11]
    layer_refs = in_refs[11:11 + 4 * n_extra]
    whc_ref = in_refs[11 + 4 * n_extra]
    bhc_ref = in_refs[12 + 4 * n_extra]

    mm_dtype = x_ref.dtype             # matmul operand dtype (f32 or bf16)

    # h0 = z_to_h(z); the PyTorch module repeats it for every GRU layer.
    z = z_ref[...]                                                  # (Bp, L)
    h0 = (jnp.dot(z, wzh_ref[...], preferred_element_type=jnp.float32)
          + bzh_ref[...])                                           # (Bp, H) f32

    # Layer-0 input projection hoisted over all T; the z term is time-invariant
    # so it is computed once and added per aligned (8-row) time slice.
    gi0_all = jnp.dot(x_ref[...], wih0x_ref[...],
                      preferred_element_type=jnp.float32)           # (T*Bp, 3H)
    zgi0 = (jnp.dot(z, wih0z_ref[...], preferred_element_type=jnp.float32)
            + bih0_ref[...])                                        # (Bp, 3H)

    whh0 = whh0_ref[...]
    bhn0 = bhn0_ref[...]
    extra = []
    for l in range(n_extra):
        extra.append((layer_refs[4 * l][...],      # W_ih  (H, 3H)
                      layer_refs[4 * l + 1][...],  # b_ih (+ b_hh r/z) (1, 3H)
                      layer_refs[4 * l + 2][...],  # W_hh  (H, 3H)
                      layer_refs[4 * l + 3][...])) # b_hh n-column (1, H)

    def gru_cell(gi, h_prev, whh, bhn):
        # gi already contains b_ih plus the r/z columns of b_hh.
        gh = jnp.dot(h_prev.astype(mm_dtype), whh,
                     preferred_element_type=jnp.float32)            # (Bp, 3H)
        rz = jax.nn.sigmoid(gi[:, :2 * H] + gh[:, :2 * H])          # fused r,z
        r, zg = rz[:, :H], rz[:, H:]
        n = jnp.tanh(gi[:, 2 * H:] + r * (gh[:, 2 * H:] + bhn))
        return n + zg * (h_prev - n)

    # Wavefront recurrence: layer l at step t only depends on layer l-1 at step
    # t and layer l at step t-1, so the unrolled graph lets the scheduler
    # overlap layer 0 @ t+1 with layer 1 @ t (no per-layer sequence barrier).
    h = [h0] * n_layers
    for t in range(T):
        gi0 = gi0_all[t * Bp:(t + 1) * Bp, :] + zgi0   # 8-row tile-aligned slice
        h[0] = gru_cell(gi0, h[0], whh0, bhn0)
        x_t = h[0]
        for li, (wih, bih, whh, bhn) in enumerate(extra):
            gi = (jnp.dot(x_t.astype(mm_dtype), wih,
                          preferred_element_type=jnp.float32) + bih)
            h[li + 1] = gru_cell(gi, h[li + 1], whh, bhn)
            x_t = h[li + 1]
        hout_ref[t * Bp:(t + 1) * Bp, :] = x_t         # static, sublane-aligned

    # pad_packed_sequence zero-fill: zero the final layer's padded positions.
    valid = valid_ref[...]                                          # (T*Bp, 1)
    h_all = jnp.where(valid > 0.0, hout_ref[...], 0.0)              # (T*Bp, H)

    # Output head: logits, masked cross-entropy (no logprob materialization),
    # argmax.
    logits = (jnp.dot(h_all.astype(mm_dtype), whc_ref[...],
                      preferred_element_type=jnp.float32)
              + bhc_ref[...])                                       # (T*Bp, V)
    BT, V = logits.shape

    m = jnp.max(logits, axis=-1, keepdims=True)
    shifted = logits - m
    lse = jnp.log(jnp.sum(jnp.exp(shifted), axis=-1, keepdims=True))

    ids = lax.broadcasted_iota(jnp.int32, (BT, V), 1)
    tgt = tgt_ref[...]                                              # (T*Bp, 1)
    onehot = ids == tgt
    tgt_lp = (jnp.sum(jnp.where(onehot, shifted, 0.0), axis=-1, keepdims=True)
              - lse)                                                # (T*Bp, 1)

    valid_t = tgt != pad_id                                         # ignore_index
    loss_sum = jnp.sum(jnp.where(valid_t, -tgt_lp, 0.0))
    cnt = jnp.sum(valid_t.astype(jnp.float32))
    # guard cnt == 0 (all targets == pad) -> loss 0 instead of NaN
    loss_ref[...] = jnp.reshape(loss_sum / jnp.maximum(cnt, 1.0), (1, 1))

    # argmax with first-max tie-break (matches torch.argmax / jnp.argmax).
    is_max = logits == m
    amax = jnp.min(jnp.where(is_max, ids, V), axis=-1, keepdims=True)
    xhat_ref[...] = amax.astype(jnp.int32)


# ----------------------------------------------------------------------------
# Wrapper
# ----------------------------------------------------------------------------
def char_decoder_forward(x_ids, lengths, z, params, pad_id,
                         matmul_dtype=jnp.float32):
    """x_ids: (B, T) int32 padded token ids; lengths: (B,) int32; z: (B, L)."""
    B, T = x_ids.shape
    L = z.shape[-1]
    E = params["emb"].shape[1]
    H = params["w_zh_t"].shape[1]
    V = params["w_hc_t"].shape[1]
    n_layers = params["n_layers"]

    # Sublane-align the batch: pad to a multiple of 8 with dummy length-0 rows
    # (their targets are all pad -> excluded from the loss; rows sliced off).
    Bp = max(8, ((B + 7) // 8) * 8)
    pb = Bp - B
    x_ids_p = jnp.pad(x_ids.astype(jnp.int32), ((0, pb), (0, 0)),
                      constant_values=pad_id)
    lengths_p = jnp.pad(lengths.astype(jnp.int32), ((0, pb),))
    z_p = jnp.pad(z.astype(jnp.float32), ((0, pb), (0, 0)))

    # Time-major embedding gather (no big activation transpose on the host, and
    # no (T,B,L) z broadcast: z is handled inside the kernel once).
    x_emb_tm = jnp.take(params["emb"], x_ids_p.T, axis=0)           # (T, Bp, E)
    x_emb_tm = x_emb_tm.reshape(T * Bp, E).astype(matmul_dtype)

    # valid[t, b] = t < length[b]  (pad_packed_sequence zero-fill), time-major.
    valid_tm = (jnp.arange(T, dtype=jnp.int32)[:, None] < lengths_p[None, :])
    valid_tm = valid_tm.astype(jnp.float32).reshape(T * Bp, 1)

    # targets: x[:, 1:]; last position per row set to pad so it is ignored,
    # which reproduces the y[:, :-1] truncation.
    tgt = jnp.concatenate(
        [x_ids_p[:, 1:], jnp.full((Bp, 1), pad_id, jnp.int32)], axis=1)
    tgt_tm = tgt.T.reshape(T * Bp, 1).astype(jnp.int32)

    # One-time weight prep: split layer-0 W_ih into x_emb / z parts, fold the
    # r/z columns of b_hh into b_ih (the n-column stays separate: it is scaled
    # by the reset gate).
    def fold_bias(b_ih, b_hh):
        b_eff = jnp.concatenate([b_ih[:, :2 * H] + b_hh[:, :2 * H],
                                 b_ih[:, 2 * H:]], axis=1).astype(jnp.float32)
        return b_eff, b_hh[:, 2 * H:].astype(jnp.float32)

    w_ih0 = params["w_ih_t"][0]
    b_ih0_eff, b_hn0 = fold_bias(params["b_ih"][0], params["b_hh"][0])

    inputs = [x_emb_tm, valid_tm, tgt_tm,
              z_p.astype(matmul_dtype),
              params["w_zh_t"].astype(matmul_dtype),
              params["b_zh"].astype(jnp.float32),
              w_ih0[:E, :].astype(matmul_dtype),
              w_ih0[E:, :].astype(matmul_dtype),
              b_ih0_eff,
              params["w_hh_t"][0].astype(matmul_dtype),
              b_hn0]
    for l in range(1, n_layers):
        b_eff, b_hn = fold_bias(params["b_ih"][l], params["b_hh"][l])
        inputs += [params["w_ih_t"][l].astype(matmul_dtype), b_eff,
                   params["w_hh_t"][l].astype(matmul_dtype), b_hn]
    inputs += [params["w_hc_t"].astype(matmul_dtype),
               params["b_hc"].astype(jnp.float32)]

    # Explicit VMEM budget (bytes): activations + head temporaries + weights,
    # with 2x headroom; floor at 16 MiB, cap below physical (v7x has 64 MiB/TC).
    mm_b = jnp.dtype(matmul_dtype).itemsize
    act_bytes = T * Bp * (E * mm_b      # x_emb
                          + 4 * 3 * H   # hoisted layer-0 gates
                          + 4 * H       # hout scratch
                          + 4 * 4 * V   # logits / shifted / exp / onehot-ish
                          + 12)         # valid, tgt, xhat
    w_bytes = mm_b * (L * H + (E + L) * 3 * H
                      + (2 * n_layers - 1) * H * 3 * H + H * V) \
        + 4 * (n_layers * 4 * H + H + V)
    vmem_limit = int(min(max(2 * (act_bytes + w_bytes) + (2 << 20), 16 << 20),
                         100 << 20))

    vmem = pl.BlockSpec(memory_space=pltpu.MemorySpace.VMEM)
    loss, xhat_tm = pl.pallas_call(
        functools.partial(fused_decoder_kernel, n_layers, T, Bp, H, pad_id),
        out_shape=(jax.ShapeDtypeStruct((1, 1), jnp.float32),
                   jax.ShapeDtypeStruct((T * Bp, 1), jnp.int32)),
        in_specs=[vmem] * len(inputs),
        out_specs=(vmem, vmem),
        scratch_shapes=[pltpu.VMEM((T * Bp, H), jnp.float32)],
        compiler_params=pltpu.CompilerParams(vmem_limit_bytes=vmem_limit),
    )(*inputs)

    x_hat = xhat_tm.reshape(T, Bp).T[:B, :]                         # (B, T)
    return loss[0, 0], x_hat


# ----------------------------------------------------------------------------
# Pure-JAX reference (for correctness check of the Pallas lowering)
# ----------------------------------------------------------------------------
def _ref_forward(x_ids, lengths, z, params, pad_id):
    B, T = x_ids.shape
    x_emb = jnp.take(params["emb"], x_ids, axis=0)
    z_rep = jnp.broadcast_to(z[:, None, :], (B, T, z.shape[-1]))
    x_tbf = jnp.transpose(jnp.concatenate([x_emb, z_rep], -1), (1, 0, 2))
    h0 = z @ params["w_zh_t"] + params["b_zh"]

    def layer(x_tbf, w_ih_t, b_ih, w_hh_t, b_hh):
        H = w_hh_t.shape[0]

        def step(h, inp):
            x_t, t = inp
            gi = x_t @ w_ih_t + b_ih
            gh = h @ w_hh_t + b_hh
            r = jax.nn.sigmoid(gi[:, :H] + gh[:, :H])
            zg = jax.nn.sigmoid(gi[:, H:2 * H] + gh[:, H:2 * H])
            n = jnp.tanh(gi[:, 2 * H:] + r * gh[:, 2 * H:])
            h_new = (1.0 - zg) * n + zg * h
            out = jnp.where(lengths[:, None] > t, h_new, 0.0)
            return h_new, out

        _, outs = lax.scan(step, h0, (x_tbf, jnp.arange(x_tbf.shape[0])))
        return outs

    cur = x_tbf
    for l in range(params["n_layers"]):
        cur = layer(cur, params["w_ih_t"][l], params["b_ih"][l],
                    params["w_hh_t"][l], params["b_hh"][l])
    out = jnp.transpose(cur, (1, 0, 2))
    y = out @ params["w_hc_t"] + params["b_hc"]                    # (B, T, V)
    lp = jax.nn.log_softmax(y, axis=-1)
    tgt = x_ids[:, 1:]
    tgt_lp = jnp.take_along_axis(lp[:, :-1], tgt[..., None], axis=-1)[..., 0]
    valid = tgt != pad_id
    loss = jnp.sum(jnp.where(valid, -tgt_lp, 0.0)) / jnp.sum(valid)
    return loss, jnp.argmax(y, axis=-1).astype(jnp.int32)


# ----------------------------------------------------------------------------
# Main
# ----------------------------------------------------------------------------
if __name__ == "__main__":
    # Small shapes consistent with the module.
    B, T = 2, 8            # batch, padded sequence length
    V, E = 16, 8           # vocab size, embedding dim
    L, H = 16, 32          # latent dim, hidden dim
    N_LAYERS = 2
    PAD, BOS = 0, 1

    key = jax.random.PRNGKey(0)
    ks = jax.random.split(key, 16)

    def rnd(k, shape, scale=0.1):
        return scale * jax.random.normal(k, shape, dtype=jnp.float32)

    params = {
        "n_layers": N_LAYERS,
        "emb": rnd(ks[0], (V, E), 1.0),
        "w_zh_t": rnd(ks[1], (L, H)),
        "b_zh": rnd(ks[2], (1, H)),
        "w_hc_t": rnd(ks[3], (H, V)),
        "b_hc": rnd(ks[4], (1, V)),
        "w_ih_t": [], "b_ih": [], "w_hh_t": [], "b_hh": [],
    }
    for l in range(N_LAYERS):
        in_dim = (E + L) if l == 0 else H
        params["w_ih_t"].append(rnd(ks[5 + l], (in_dim, 3 * H)))
        params["b_ih"].append(rnd(ks[7 + l], (1, 3 * H)))
        params["w_hh_t"].append(rnd(ks[9 + l], (1 * H, 3 * H)))
        params["b_hh"].append(rnd(ks[11 + l], (1, 3 * H)))

    # Padded token ids (pad_sequence semantics), descending lengths.
    lengths = jnp.array([T, T - 2], dtype=jnp.int32)
    tok = jax.random.randint(ks[13], (B, T), 3, V, dtype=jnp.int32)
    pos = jnp.arange(T)[None, :]
    x_ids = jnp.where(pos < lengths[:, None], tok, PAD)
    x_ids = x_ids.at[:, 0].set(BOS)

    z = rnd(ks[14], (B, L), 1.0)

    # f32 run: exact semantics check against the pure-JAX reference.
    loss, x_hat = char_decoder_forward(x_ids, lengths, z, params, PAD,
                                       matmul_dtype=jnp.float32)
    loss = jax.block_until_ready(loss)
    x_hat = jax.block_until_ready(x_hat)

    ref_loss, ref_x_hat = _ref_forward(x_ids, lengths, z, params, PAD)
    assert jnp.isfinite(loss)
    assert jnp.allclose(loss, ref_loss, rtol=2e-4, atol=1e-4)
    assert jnp.array_equal(x_hat, ref_x_hat)

    # bf16-MXU run (v6e/v7x feeding): loose check only (bf16 operand rounding).
    loss_bf16, x_hat_bf16 = char_decoder_forward(
        x_ids, lengths, z, params, PAD, matmul_dtype=jnp.bfloat16)
    loss_bf16 = jax.block_until_ready(loss_bf16)
    jax.block_until_ready(x_hat_bf16)
    assert jnp.isfinite(loss_bf16)
    assert jnp.allclose(loss_bf16, ref_loss, rtol=5e-2, atol=5e-2)

    print("KERNEL_OK")
</pallas_src>

<mosaic_0001>
module attributes {stable_mosaic.version = 11 : i64} {
  func.func @fused_decoder_kernel(%arg0: memref<64x8xf32, #tpu.memory_space<vmem>>, %arg1: memref<64x1xf32, #tpu.memory_space<vmem>>, %arg2: memref<64x1xi32, #tpu.memory_space<vmem>>, %arg3: memref<8x16xf32, #tpu.memory_space<vmem>>, %arg4: memref<16x32xf32, #tpu.memory_space<vmem>>, %arg5: memref<1x32xf32, #tpu.memory_space<vmem>>, %arg6: memref<8x96xf32, #tpu.memory_space<vmem>>, %arg7: memref<16x96xf32, #tpu.memory_space<vmem>>, %arg8: memref<1x96xf32, #tpu.memory_space<vmem>>, %arg9: memref<32x96xf32, #tpu.memory_space<vmem>>, %arg10: memref<1x32xf32, #tpu.memory_space<vmem>>, %arg11: memref<32x96xf32, #tpu.memory_space<vmem>>, %arg12: memref<1x96xf32, #tpu.memory_space<vmem>>, %arg13: memref<32x96xf32, #tpu.memory_space<vmem>>, %arg14: memref<1x32xf32, #tpu.memory_space<vmem>>, %arg15: memref<32x16xf32, #tpu.memory_space<vmem>>, %arg16: memref<1x16xf32, #tpu.memory_space<vmem>>, %arg17: memref<1x1xf32, #tpu.memory_space<vmem>>, %arg18: memref<64x1xi32, #tpu.memory_space<vmem>>, %arg19: memref<64x32xf32, #tpu.memory_space<vmem>>) attributes {dimension_semantics = [], scalar_prefetch = 0 : i64, scratch_operands = 1 : i64, tpu.core_type = #tpu.core_type<tc>} {
    %c0 = arith.constant 0 : index
    %c0_0 = arith.constant 0 : index
    %0 = vector.load %arg3[%c0, %c0_0] : memref<8x16xf32, #tpu.memory_space<vmem>>, vector<8x16xf32>
    %c0_1 = arith.constant 0 : index
    %c0_2 = arith.constant 0 : index
    %1 = vector.load %arg4[%c0_1, %c0_2] : memref<16x32xf32, #tpu.memory_space<vmem>>, vector<16x32xf32>
    %cst = arith.constant dense<0.000000e+00> : vector<8x32xf32>
    %2 = tpu.matmul %0, %1, %cst {dimension_numbers = #tpu.dot_dimension_numbers<[1], [0], [0], [1], [0, 0, 1, 1], [], []>} : vector<8x16xf32>, vector<16x32xf32>, vector<8x32xf32> -> vector<8x32xf32>
    %c0_3 = arith.constant 0 : index
    %c0_4 = arith.constant 0 : index
    %3 = vector.load %arg5[%c0_3, %c0_4] : memref<1x32xf32, #tpu.memory_space<vmem>>, vector<1x32xf32>
    %4 = vector.broadcast %3 : vector<1x32xf32> to vector<8x32xf32>
    %5 = arith.addf %2, %4 : vector<8x32xf32>
    %c0_5 = arith.constant 0 : index
    %c0_6 = arith.constant 0 : index
    %6 = vector.load %arg0[%c0_5, %c0_6] : memref<64x8xf32, #tpu.memory_space<vmem>>, vector<64x8xf32>
    %c0_7 = arith.constant 0 : index
    %c0_8 = arith.constant 0 : index
    %7 = vector.load %arg6[%c0_7, %c0_8] : memref<8x96xf32, #tpu.memory_space<vmem>>, vector<8x96xf32>
    %cst_9 = arith.constant dense<0.000000e+00> : vector<64x96xf32>
    %8 = tpu.matmul %6, %7, %cst_9 {dimension_numbers = #tpu.dot_dimension_numbers<[1], [0], [0], [1], [0, 0, 1, 1], [], []>} : vector<64x8xf32>, vector<8x96xf32>, vector<64x96xf32> -> vector<64x96xf32>
    %c0_10 = arith.constant 0 : index
    %c0_11 = arith.constant 0 : index
    %9 = vector.load %arg7[%c0_10, %c0_11] : memref<16x96xf32, #tpu.memory_space<vmem>>, vector<16x96xf32>
    %cst_12 = arith.constant dense<0.000000e+00> : vector<8x96xf32>
    %10 = tpu.matmul %0, %9, %cst_12 {dimension_numbers = #tpu.dot_dimension_numbers<[1], [0], [0], [1], [0, 0, 1, 1], [], []>} : vector<8x16xf32>, vector<16x96xf32>, vector<8x96xf32> -> vector<8x96xf32>
    %c0_13 = arith.constant 0 : index
    %c0_14 = arith.constant 0 : index
    %11 = vector.load %arg8[%c0_13, %c0_14] : memref<1x96xf32, #tpu.memory_space<vmem>>, vector<1x96xf32>
    %12 = vector.broadcast %11 : vector<1x96xf32> to vector<8x96xf32>
    %13 = arith.addf %10, %12 : vector<8x96xf32>
    %c0_15 = arith.constant 0 : index
    %c0_16 = arith.constant 0 : index
    %14 = vector.load %arg9[%c0_15, %c0_16] : memref<32x96xf32, #tpu.memory_space<vmem>>, vector<32x96xf32>
    %c0_17 = arith.constant 0 : index
    %c0_18 = arith.constant 0 : index
    %15 = vector.load %arg10[%c0_17, %c0_18] : memref<1x32xf32, #tpu.memory_space<vmem>>, vector<1x32xf32>
    %c0_19 = arith.constant 0 : index
    %c0_20 = arith.constant 0 : index
    %16 = vector.load %arg11[%c0_19, %c0_20] : memref<32x96xf32, #tpu.memory_space<vmem>>, vector<32x96xf32>
    %c0_21 = arith.constant 0 : index
    %c0_22 = arith.constant 0 : index
    %17 = vector.load %arg12[%c0_21, %c0_22] : memref<1x96xf32, #tpu.memory_space<vmem>>, vector<1x96xf32>
    %c0_23 = arith.constant 0 : index
    %c0_24 = arith.constant 0 : index
    %18 = vector.load %arg13[%c0_23, %c0_24] : memref<32x96xf32, #tpu.memory_space<vmem>>, vector<32x96xf32>
    %c0_25 = arith.constant 0 : index
    %c0_26 = arith.constant 0 : index
    %19 = vector.load %arg14[%c0_25, %c0_26] : memref<1x32xf32, #tpu.memory_space<vmem>>, vector<1x32xf32>
    %20 = vector.extract_strided_slice %8 {offsets = [0, 0], sizes = [8, 96], strides = [1, 1]} : vector<64x96xf32> to vector<8x96xf32>
    %21 = arith.addf %20, %13 : vector<8x96xf32>
    %cst_27 = arith.constant dense<0.000000e+00> : vector<8x96xf32>
    %22 = tpu.matmul %5, %14, %cst_27 {dimension_numbers = #tpu.dot_dimension_numbers<[1], [0], [0], [1], [0, 0, 1, 1], [], []>} : vector<8x32xf32>, vector<32x96xf32>, vector<8x96xf32> -> vector<8x96xf32>
    %23 = vector.extract_strided_slice %21 {offsets = [0, 0], sizes = [8, 64], strides = [1, 1]} : vector<8x96xf32> to vector<8x64xf32>
    %24 = vector.extract_strided_slice %22 {offsets = [0, 0], sizes = [8, 64], strides = [1, 1]} : vector<8x96xf32> to vector<8x64xf32>
    %25 = arith.addf %23, %24 : vector<8x64xf32>
    %26 = arith.negf %25 : vector<8x64xf32>
    %27 = math.exp %26 : vector<8x64xf32>
    %cst_28 = arith.constant 1.000000e+00 : f32
    %28 = vector.broadcast %cst_28 : f32 to vector<8x64xf32>
    %29 = arith.addf %28, %27 : vector<8x64xf32>
    %30 = arith.divf %28, %29 : vector<8x64xf32>
    %31 = vector.extract_strided_slice %30 {offsets = [0, 0], sizes = [8, 32], strides = [1, 1]} : vector<8x64xf32> to vector<8x32xf32>
    %32 = vector.extract_strided_slice %30 {offsets = [0, 32], sizes = [8, 32], strides = [1, 1]} : vector<8x64xf32> to vector<8x32xf32>
    %33 = vector.extract_strided_slice %21 {offsets = [0, 64], sizes = [8, 32], strides = [1, 1]} : vector<8x96xf32> to vector<8x32xf32>
    %34 = vector.extract_strided_slice %22 {offsets = [0, 64], sizes = [8, 32], strides = [1, 1]} : vector<8x96xf32> to vector<8x32xf32>
    %35 = vector.broadcast %15 : vector<1x32xf32> to vector<8x32xf32>
    %36 = arith.addf %34, %35 : vector<8x32xf32>
    %37 = arith.mulf %31, %36 : vector<8x32xf32>
    %38 = arith.addf %33, %37 : vector<8x32xf32>
    %39 = math.tanh %38 : vector<8x32xf32>
    %40 = arith.subf %5, %39 : vector<8x32xf32>
    %41 = arith.mulf %32, %40 : vector<8x32xf32>
    %42 = arith.addf %39, %41 : vector<8x32xf32>
    %cst_29 = arith.constant dense<0.000000e+00> : vector<8x96xf32>
    %43 = tpu.matmul %42, %16, %cst_29 {dimension_numbers = #tpu.dot_dimension_numbers<[1], [0], [0], [1], [0, 0, 1, 1], [], []>} : vector<8x32xf32>, vector<32x96xf32>, vector<8x96xf32> -> vector<8x96xf32>
    %44 = vector.broadcast %17 : vector<1x96xf32> to vector<8x96xf32>
    %45 = arith.addf %43, %44 : vector<8x96xf32>
    %cst_30 = arith.constant dense<0.000000e+00> : vector<8x96xf32>
    %46 = tpu.matmul %5, %18, %cst_30 {dimension_numbers = #tpu.dot_dimension_numbers<[1], [0], [0], [1], [0, 0, 1, 1], [], []>} : vector<8x32xf32>, vector<32x96xf32>, vector<8x96xf32> -> vector<8x96xf32>
    %47 = vector.extract_strided_slice %45 {offsets = [0, 0], sizes = [8, 64], strides = [1, 1]} : vector<8x96xf32> to vector<8x64xf32>
    %48 = vector.extract_strided_slice %46 {offsets = [0, 0], sizes = [8, 64], strides = [1, 1]} : vector<8x96xf32> to vector<8x64xf32>
    %49 = arith.addf %47, %48 : vector<8x64xf32>
    %50 = arith.negf %49 : vector<8x64xf32>
    %51 = math.exp %50 : vector<8x64xf32>
    %cst_31 = arith.constant 1.000000e+00 : f32
    %52 = vector.broadcast %cst_31 : f32 to vector<8x64xf32>
    %53 = arith.addf %52, %51 : vector<8x64xf32>
    %54 = arith.divf %52, %53 : vector<8x64xf32>
    %55 = vector.extract_strided_slice %54 {offsets = [0, 0], sizes = [8, 32], strides = [1, 1]} : vector<8x64xf32> to vector<8x32xf32>
    %56 = vector.extract_strided_slice %54 {offsets = [0, 32], sizes = [8, 32], strides = [1, 1]} : vector<8x64xf32> to vector<8x32xf32>
    %57 = vector.extract_strided_slice %45 {offsets = [0, 64], sizes = [8, 32], strides = [1, 1]} : vector<8x96xf32> to vector<8x32xf32>
    %58 = vector.extract_strided_slice %46 {offsets = [0, 64], sizes = [8, 32], strides = [1, 1]} : vector<8x96xf32> to vector<8x32xf32>
    %59 = vector.broadcast %19 : vector<1x32xf32> to vector<8x32xf32>
    %60 = arith.addf %58, %59 : vector<8x32xf32>
    %61 = arith.mulf %55, %60 : vector<8x32xf32>
    %62 = arith.addf %57, %61 : vector<8x32xf32>
    %63 = math.tanh %62 : vector<8x32xf32>
    %64 = arith.subf %5, %63 : vector<8x32xf32>
    %65 = arith.mulf %56, %64 : vector<8x32xf32>
    %66 = arith.addf %63, %65 : vector<8x32xf32>
    %c0_32 = arith.constant 0 : index
    %c0_33 = arith.constant 0 : index
    %67 = vector.load %arg19[%c0_32, %c0_33] : memref<64x32xf32, #tpu.memory_space<vmem>>, vector<8x32xf32>
    tpu.vector_store %arg19[%c0_32, %c0_33], %66 {strides = array<i32>} : memref<64x32xf32, #tpu.memory_space<vmem>>, vector<8x32xf32>,
    %68 = vector.extract_strided_slice %8 {offsets = [8, 0], sizes = [8, 96], strides = [1, 1]} : vector<64x96xf32> to vector<8x96xf32>
    %69 = arith.addf %68, %13 : vector<8x96xf32>
    %cst_34 = arith.constant dense<0.000000e+00> : vector<8x96xf32>
    %70 = tpu.matmul %42, %14, %cst_34 {dimension_numbers = #tpu.dot_dimension_numbers<[1], [0], [0], [1], [0, 0, 1, 1], [], []>} : vector<8x32xf32>, vector<32x96xf32>, vector<8x96xf32> -> vector<8x96xf32>
    %71 = vector.extract_strided_slice %69 {offsets = [0, 0], sizes = [8, 64], strides = [1, 1]} : vector<8x96xf32> to vector<8x64xf32>
    %72 = vector.extract_strided_slice %70 {offsets = [0, 0], sizes = [8, 64], strides = [1, 1]} : vector<8x96xf32> to vector<8x64xf32>
    %73 = arith.addf %71, %72 : vector<8x64xf32>
    %74 = arith.negf %73 : vector<8x64xf32>
    %75 = math.exp %74 : vector<8x64xf32>
    %cst_35 = arith.constant 1.000000e+00 : f32
    %76 = vector.broadcast %cst_35 : f32 to vector<8x64xf32>
    %77 = arith.addf %76, %75 : vector<8x64xf32>
    %78 = arith.divf %76, %77 : vector<8x64xf32>
    %79 = vector.extract_strided_slice %78 {offsets = [0, 0], sizes = [8, 32], strides = [1, 1]} : vector<8x64xf32> to vector<8x32xf32>
    %80 = vector.extract_strided_slice %78 {offsets = [0, 32], sizes = [8, 32], strides = [1, 1]} : vector<8x64xf32> to vector<8x32xf32>
    %81 = vector.extract_strided_slice %69 {offsets = [0, 64], sizes = [8, 32], strides = [1, 1]} : vector<8x96xf32> to vector<8x32xf32>
    %82 = vector.extract_strided_slice %70 {offsets = [0, 64], sizes = [8, 32], strides = [1, 1]} : vector<8x96xf32> to vector<8x32xf32>
    %83 = vector.broadcast %15 : vector<1x32xf32> to vector<8x32xf32>
    %84 = arith.addf %82, %83 : vector<8x32xf32>
    %85 = arith.mulf %79, %84 : vector<8x32xf32>
    %86 = arith.addf %81, %85 : vector<8x32xf32>
    %87 = math.tanh %86 : vector<8x32xf32>
    %88 = arith.subf %42, %87 : vector<8x32xf32>
    %89 = arith.mulf %80, %88 : vector<8x32xf32>
    %90 = arith.addf %87, %89 : vector<8x32xf32>
    %cst_36 = arith.constant dense<0.000000e+00> : vector<8x96xf32>
    %91 = tpu.matmul %90, %16, %cst_36 {dimension_numbers = #tpu.dot_dimension_numbers<[1], [0], [0], [1], [0, 0, 1, 1], [], []>} : vector<8x32xf32>, vector<32x96xf32>, vector<8x96xf32> -> vector<8x96xf32>
    %92 = vector.broadcast %17 : vector<1x96xf32> to vector<8x96xf32>
    %93 = arith.addf %91, %92 : vector<8x96xf32>
    %cst_37 = arith.constant dense<0.000000e+00> : vector<8x96xf32>
    %94 = tpu.matmul %66, %18, %cst_37 {dimension_numbers = #tpu.dot_dimension_numbers<[1], [0], [0], [1], [0, 0, 1, 1], [], []>} : vector<8x32xf32>, vector<32x96xf32>, vector<8x96xf32> -> vector<8x96xf32>
    %95 = vector.extract_strided_slice %93 {offsets = [0, 0], sizes = [8, 64], strides = [1, 1]} : vector<8x96xf32> to vector<8x64xf32>
    %96 = vector.extract_strided_slice %94 {offsets = [0, 0], sizes = [8, 64], strides = [1, 1]} : vector<8x96xf32> to vector<8x64xf32>
    %97 = arith.addf %95, %96 : vector<8x64xf32>
    %98 = arith.negf %97 : vector<8x64xf32>
    %99 = math.exp %98 : vector<8x64xf32>
    %cst_38 = arith.constant 1.000000e+00 : f32
    %100 = vector.broadcast %cst_38 : f32 to vector<8x64xf32>
    %101 = arith.addf %100, %99 : vector<8x64xf32>
    %102 = arith.divf %100, %101 : vector<8x64xf32>
    %103 = vector.extract_strided_slice %102 {offsets = [0, 0], sizes = [8, 32], strides = [1, 1]} : vector<8x64xf32> to vector<8x32xf32>
    %104 = vector.extract_strided_slice %102 {offsets = [0, 32], sizes = [8, 32], strides = [1, 1]} : vector<8x64xf32> to vector<8x32xf32>
    %105 = vector.extract_strided_slice %93 {offsets = [0, 64], sizes = [8, 32], strides = [1, 1]} : vector<8x96xf32> to vector<8x32xf32>
    %106 = vector.extract_strided_slice %94 {offsets = [0, 64], sizes = [8, 32], strides = [1, 1]} : vector<8x96xf32> to vector<8x32xf32>
    %107 = vector.broadcast %19 : vector<1x32xf32> to vector<8x32xf32>
    %108 = arith.addf %106, %107 : vector<8x32xf32>
    %109 = arith.mulf %103, %108 : vector<8x32xf32>
    %110 = arith.addf %105, %109 : vector<8x32xf32>
    %111 = math.tanh %110 : vector<8x32xf32>
    %112 = arith.subf %66, %111 : vector<8x32xf32>
    %113 = arith.mulf %104, %112 : vector<8x32xf32>
    %114 = arith.addf %111, %113 : vector<8x32xf32>
    %c8 = arith.constant 8 : index
    %c0_39 = arith.constant 0 : index
    %115 = vector.load %arg19[%c8, %c0_39] : memref<64x32xf32, #tpu.memory_space<vmem>>, vector<8x32xf32>
    tpu.vector_store %arg19[%c8, %c0_39], %114 {strides = array<i32>} : memref<64x32xf32, #tpu.memory_space<vmem>>, vector<8x32xf32>,
    %116 = vector.extract_strided_slice %8 {offsets = [16, 0], sizes = [8, 96], strides = [1, 1]} : vector<64x96xf32> to vector<8x96xf32>
    %117 = arith.addf %116, %13 : vector<8x96xf32>
    %cst_40 = arith.constant dense<0.000000e+00> : vector<8x96xf32>
    %118 = tpu.matmul %90, %14, %cst_40 {dimension_numbers = #tpu.dot_dimension_numbers<[1], [0], [0], [1], [0, 0, 1, 1], [], []>} : vector<8x32xf32>, vector<32x96xf32>, vector<8x96xf32> -> vector<8x96xf32>
    %119 = vector.extract_strided_slice %117 {offsets = [0, 0], sizes = [8, 64], strides = [1, 1]} : vector<8x96xf32> to vector<8x64xf32>
    %120 = vector.extract_strided_slice %118 {offsets = [0, 0], sizes = [8, 64], strides = [1, 1]} : vector<8x96xf32> to vector<8x64xf32>
    %121 = arith.addf %119, %120 : vector<8x64xf32>
    %122 = arith.negf %121 : vector<8x64xf32>
    %123 = math.exp %122 : vector<8x64xf32>
    %cst_41 = arith.constant 1.000000e+00 : f32
    %124 = vector.broadcast %cst_41 : f32 to vector<8x64xf32>
    %125 = arith.addf %124, %123 : vector<8x64xf32>
    %126 = arith.divf %124, %125 : vector<8x64xf32>
    %127 = vector.extract_strided_slice %126 {offsets = [0, 0], sizes = [8, 32], strides = [1, 1]} : vector<8x64xf32> to vector<8x32xf32>
    %128 = vector.extract_strided_slice %126 {offsets = [0, 32], sizes = [8, 32], strides = [1, 1]} : vector<8x64xf32> to vector<8x32xf32>
    %129 = vector.extract_strided_slice %117 {offsets = [0, 64], sizes = [8, 32], strides = [1, 1]} : vector<8x96xf32> to vector<8x32xf32>
    %130 = vector.extract_strided_slice %118 {offsets = [0, 64], sizes = [8, 32], strides = [1, 1]} : vector<8x96xf32> to vector<8x32xf32>
    %131 = vector.broadcast %15 : vector<1x32xf32> to vector<8x32xf32>
    %132 = arith.addf %130, %131 : vector<8x32xf32>
    %133 = arith.mulf %127, %132 : vector<8x32xf32>
    %134 = arith.addf %129, %133 : vector<8x32xf32>
    %135 = math.tanh %134 : vector<8x32xf32>
    %136 = arith.subf %90, %135 : vector<8x32xf32>
    %137 = arith.mulf %128, %136 : vector<8x32xf32>
    %138 = arith.addf %135, %137 : vector<8x32xf32>
    %cst_42 = arith.constant dense<0.000000e+00> : vector<8x96xf32>
    %139 = tpu.matmul %138, %16, %cst_42 {dimension_numbers = #tpu.dot_dimension_numbers<[1], [0], [0], [1], [0, 0, 1, 1], [], []>} : vector<8x32xf32>, vector<32x96xf32>, vector<8x96xf32> -> vector<8x96xf32>
    %140 = vector.broadcast %17 : vector<1x96xf32> to vector<8x96xf32>
    %141 = arith.addf %139, %140 : vector<8x96xf32>
    %cst_43 = arith.constant dense<0.000000e+00> : vector<8x96xf32>
    %142 = tpu.matmul %114, %18, %cst_43 {dimension_numbers = #tpu.dot_dimension_numbers<[1], [0], [0], [1], [0, 0, 1, 1], [], []>} : vector<8x32xf32>, vector<32x96xf32>, vector<8x96xf32> -> vector<8x96xf32>
    %143 = vector.extract_strided_slice %141 {offsets = [0, 0], sizes = [8, 64], strides = [1, 1]} : vector<8x96xf32> to vector<8x64xf32>
    %144 = vector.extract_strided_slice %142 {offsets = [0, 0], sizes = [8, 64], strides = [1, 1]} : vector<8x96xf32> to vector<8x64xf32>
    %145 = arith.addf %143, %144 : vector<8x64xf32>
    %146 = arith.negf %145 : vector<8x64xf32>
    %147 = math.exp %146 : vector<8x64xf32>
    %cst_44 = arith.constant 1.000000e+00 : f32
    %148 = vector.broadcast %cst_44 : f32 to vector<8x64xf32>
    %149 = arith.addf %148, %147 : vector<8x64xf32>
    %150 = arith.divf %148, %149 : vector<8x64xf32>
    %151 = vector.extract_strided_slice %150 {offsets = [0, 0], sizes = [8, 32], strides = [1, 1]} : vector<8x64xf32> to vector<8x32xf32>
    %152 = vector.extract_strided_slice %150 {offsets = [0, 32], sizes = [8, 32], strides = [1, 1]} : vector<8x64xf32> to vector<8x32xf32>
    %153 = vector.extract_strided_slice %141 {offsets = [0, 64], sizes = [8, 32], strides = [1, 1]} : vector<8x96xf32> to vector<8x32xf32>
    %154 = vector.extract_strided_slice %142 {offsets = [0, 64], sizes = [8, 32], strides = [1, 1]} : vector<8x96xf32> to vector<8x32xf32>
    %155 = vector.broadcast %19 : vector<1x32xf32> to vector<8x32xf32>
    %156 = arith.addf %154, %155 : vector<8x32xf32>
    %157 = arith.mulf %151, %156 : vector<8x32xf32>
    %158 = arith.addf %153, %157 : vector<8x32xf32>
    %159 = math.tanh %158 : vector<8x32xf32>
    %160 = arith.subf %114, %159 : vector<8x32xf32>
    %161 = arith.mulf %152, %160 : vector<8x32xf32>
    %162 = arith.addf %159, %161 : vector<8x32xf32>
    %c16 = arith.constant 16 : index
    %c0_45 = arith.constant 0 : index
    %163 = vector.load %arg19[%c16, %c0_45] : memref<64x32xf32, #tpu.memory_space<vmem>>, vector<8x32xf32>
    tpu.vector_store %arg19[%c16, %c0_45], %162 {strides = array<i32>} : memref<64x32xf32, #tpu.memory_space<vmem>>, vector<8x32xf32>,
    %164 = vector.extract_strided_slice %8 {offsets = [24, 0], sizes = [8, 96], strides = [1, 1]} : vector<64x96xf32> to vector<8x96xf32>
    %165 = arith.addf %164, %13 : vector<8x96xf32>
    %cst_46 = arith.constant dense<0.000000e+00> : vector<8x96xf32>
    %166 = tpu.matmul %138, %14, %cst_46 {dimension_numbers = #tpu.dot_dimension_numbers<[1], [0], [0], [1], [0, 0, 1, 1], [], []>} : vector<8x32xf32>, vector<32x96xf32>, vector<8x96xf32> -> vector<8x96xf32>
    %167 = vector.extract_strided_slice %165 {offsets = [0, 0], sizes = [8, 64], strides = [1, 1]} : vector<8x96xf32> to vector<8x64xf32>
    %168 = vector.extract_strided_slice %166 {offsets = [0, 0], sizes = [8, 64], strides = [1, 1]} : vector<8x96xf32> to vector<8x64xf32>
    %169 = arith.addf %167, %168 : vector<8x64xf32>
    %170 = arith.negf %169 : vector<8x64xf32>
    %171 = math.exp %170 : vector<8x64xf32>
    %cst_47 = arith.constant 1.000000e+00 : f32
    %172 = vector.broadcast %cst_47 : f32 to vector<8x64xf32>
    %173 = arith.addf %172, %171 : vector<8x64xf32>
    %174 = arith.divf %172, %173 : vector<8x64xf32>
    %175 = vector.extract_strided_slice %174 {offsets = [0, 0], sizes = [8, 32], strides = [1, 1]} : vector<8x64xf32> to vector<8x32xf32>
    %176 = vector.extract_strided_slice %174 {offsets = [0, 32], sizes = [8, 32], strides = [1, 1]} : vector<8x64xf32> to vector<8x32xf32>
    %177 = vector.extract_strided_slice %165 {offsets = [0, 64], sizes = [8, 32], strides = [1, 1]} : vector<8x96xf32> to vector<8x32xf32>
    %178 = vector.extract_strided_slice %166 {offsets = [0, 64], sizes = [8, 32], strides = [1, 1]} : vector<8x96xf32> to vector<8x32xf32>
    %179 = vector.broadcast %15 : vector<1x32xf32> to vector<8x32xf32>
    %180 = arith.addf %178, %179 : vector<8x32xf32>
    %181 = arith.mulf %175, %180 : vector<8x32xf32>
    %182 = arith.addf %177, %181 : vector<8x32xf32>
    %183 = math.tanh %182 : vector<8x32xf32>
    %184 = arith.subf %138, %183 : vector<8x32xf32>
    %185 = arith.mulf %176, %184 : vector<8x32xf32>
    %186 = arith.addf %183, %185 : vector<8x32xf32>
    %cst_48 = arith.constant dense<0.000000e+00> : vector<8x96xf32>
    %187 = tpu.matmul %186, %16, %cst_48 {dimension_numbers = #tpu.dot_dimension_numbers<[1], [0], [0], [1], [0, 0, 1, 1], [], []>} : vector<8x32xf32>, vector<32x96xf32>, vector<8x96xf32> -> vector<8x96xf32>
    %188 = vector.broadcast %17 : vector<1x96xf32> to vector<8x96xf32>
    %189 = arith.addf %187, %188 : vector<8x96xf32>
    %cst_49 = arith.constant dense<0.000000e+00> : vector<8x96xf32>
    %190 = tpu.matmul %162, %18, %cst_49 {dimension_numbers = #tpu.dot_dimension_numbers<[1], [0], [0], [1], [0, 0, 1, 1], [], []>} : vector<8x32xf32>, vector<32x96xf32>, vector<8x96xf32> -> vector<8x96xf32>
    %191 = vector.extract_strided_slice %189 {offsets = [0, 0], sizes = [8, 64], strides = [1, 1]} : vector<8x96xf32> to vector<8x64xf32>
    %192 = vector.extract_strided_slice %190 {offsets = [0, 0], sizes = [8, 64], strides = [1, 1]} : vector<8x96xf32> to vector<8x64xf32>
    %193 = arith.addf %191, %192 : vector<8x64xf32>
    %194 = arith.negf %193 : vector<8x64xf32>
    %195 = math.exp %194 : vector<8x64xf32>
    %cst_50 = arith.constant 1.000000e+00 : f32
    %196 = vector.broadcast %cst_50 : f32 to vector<8x64xf32>
    %197 = arith.addf %196, %195 : vector<8x64xf32>
    %198 = arith.divf %196, %197 : vector<8x64xf32>
    %199 = vector.extract_strided_slice %198 {offsets = [0, 0], sizes = [8, 32], strides = [1, 1]} : vector<8x64xf32> to vector<8x32xf32>
    %200 = vector.extract_strided_slice %198 {offsets = [0, 32], sizes = [8, 32], strides = [1, 1]} : vector<8x64xf32> to vector<8x32xf32>
    %201 = vector.extract_strided_slice %189 {offsets = [0, 64], sizes = [8, 32], strides = [1, 1]} : vector<8x96xf32> to vector<8x32xf32>
    %202 = vector.extract_strided_slice %190 {offsets = [0, 64], sizes = [8, 32], strides = [1, 1]} : vector<8x96xf32> to vector<8x32xf32>
    %203 = vector.broadcast %19 : vector<1x32xf32> to vector<8x32xf32>
    %204 = arith.addf %202, %203 : vector<8x32xf32>
    %205 = arith.mulf %199, %204 : vector<8x32xf32>
    %206 = arith.addf %201, %205 : vector<8x32xf32>
    %207 = math.tanh %206 : vector<8x32xf32>
    %208 = arith.subf %162, %207 : vector<8x32xf32>
    %209 = arith.mulf %200, %208 : vector<8x32xf32>
    %210 = arith.addf %207, %209 : vector<8x32xf32>
    %c24 = arith.constant 24 : index
    %c0_51 = arith.constant 0 : index
    %211 = vector.load %arg19[%c24, %c0_51] : memref<64x32xf32, #tpu.memory_space<vmem>>, vector<8x32xf32>
    tpu.vector_store %arg19[%c24, %c0_51], %210 {strides = array<i32>} : memref<64x32xf32, #tpu.memory_space<vmem>>, vector<8x32xf32>,
    %212 = vector.extract_strided_slice %8 {offsets = [32, 0], sizes = [8, 96], strides = [1, 1]} : vector<64x96xf32> to vector<8x96xf32>
    %213 = arith.addf %212, %13 : vector<8x96xf32>
    %cst_52 = arith.constant dense<0.000000e+00> : vector<8x96xf32>
    %214 = tpu.matmul %186, %14, %cst_52 {dimension_numbers = #tpu.dot_dimension_numbers<[1], [0], [0], [1], [0, 0, 1, 1], [], []>} : vector<8x32xf32>, vector<32x96xf32>, vector<8x96xf32> -> vector<8x96xf32>
    %215 = vector.extract_strided_slice %213 {offsets = [0, 0], sizes = [8, 64], strides = [1, 1]} : vector<8x96xf32> to vector<8x64xf32>
    %216 = vector.extract_strided_slice %214 {offsets = [0, 0], sizes = [8, 64], strides = [1, 1]} : vector<8x96xf32> to vector<8x64xf32>
    %217 = arith.addf %215, %216 : vector<8x64xf32>
    %218 = arith.negf %217 : vector<8x64xf32>
    %219 = math.exp %218 : vector<8x64xf32>
    %cst_53 = arith.constant 1.000000e+00 : f32
    %220 = vector.broadcast %cst_53 : f32 to vector<8x64xf32>
    %221 = arith.addf %220, %219 : vector<8x64xf32>
    %222 = arith.divf %220, %221 : vector<8x64xf32>
    %223 = vector.extract_strided_slice %222 {offsets = [0, 0], sizes = [8, 32], strides = [1, 1]} : vector<8x64xf32> to vector<8x32xf32>
    %224 = vector.extract_strided_slice %222 {offsets = [0, 32], sizes = [8, 32], strides = [1, 1]} : vector<8x64xf32> to vector<8x32xf32>
    %225 = vector.extract_strided_slice %213 {offsets = [0, 64], sizes = [8, 32], strides = [1, 1]} : vector<8x96xf32> to vector<8x32xf32>
    %226 = vector.extract_strided_slice %214 {offsets = [0, 64], sizes = [8, 32], strides = [1, 1]} : vector<8x96xf32> to vector<8x32xf32>
    %227 = vector.broadcast %15 : vector<1x32xf32> to vector<8x32xf32>
    %228 = arith.addf %226, %227 : vector<8x32xf32>
    %229 = arith.mulf %223, %228 : vector<8x32xf32>
    %230 = arith.addf %225, %229 : vector<8x32xf32>
    %231 = math.tanh %230 : vector<8x32xf32>
    %232 = arith.subf %186, %231 : vector<8x32xf32>
    %233 = arith.mulf %224, %232 : vector<8x32xf32>
    %234 = arith.addf %231, %233 : vector<8x32xf32>
    %cst_54 = arith.constant dense<0.000000e+00> : vector<8x96xf32>
    %235 = tpu.matmul %234, %16, %cst_54 {dimension_numbers = #tpu.dot_dimension_numbers<[1], [0], [0], [1], [0, 0, 1, 1], [], []>} : vector<8x32xf32>, vector<32x96xf32>, vector<8x96xf32> -> vector<8x96xf32>
    %236 = vector.broadcast %17 : vector<1x96xf32> to vector<8x96xf32>
    %237 = arith.addf %235, %236 : vector<8x96xf32>
    %cst_55 = arith.constant dense<0.000000e+00> : vector<8x96xf32>
    %238 = tpu.matmul %210, %18, %cst_55 {dimension_numbers = #tpu.dot_dimension_numbers<[1], [0], [0], [1], [0, 0, 1, 1], [], []>} : vector<8x32xf32>, vector<32x96xf32>, vector<8x96xf32> -> vector<8x96xf32>
    %239 = vector.extract_strided_slice %237 {offsets = [0, 0], sizes = [8, 64], strides = [1, 1]} : vector<8x96xf32> to vector<8x64xf32>
    %240 = vector.extract_strided_slice %238 {offsets = [0, 0], sizes = [8, 64], strides = [1, 1]} : vector<8x96xf32> to vector<8x64xf32>
    %241 = arith.addf %239, %240 : vector<8x64xf32>
    %242 = arith.negf %241 : vector<8x64xf32>
    %243 = math.exp %242 : vector<8x64xf32>
    %cst_56 = arith.constant 1.000000e+00 : f32
    %244 = vector.broadcast %cst_56 : f32 to vector<8x64xf32>
    %245 = arith.addf %244, %243 : vector<8x64xf32>
    %246 = arith.divf %244, %245 : vector<8x64xf32>
    %247 = vector.extract_strided_slice %246 {offsets = [0, 0], sizes = [8, 32], strides = [1, 1]} : vector<8x64xf32> to vector<8x32xf32>
    %248 = vector.extract_strided_slice %246 {offsets = [0, 32], sizes = [8, 32], strides = [1, 1]} : vector<8x64xf32> to vector<8x32xf32>
    %249 = vector.extract_strided_slice %237 {offsets = [0, 64], sizes = [8, 32], strides = [1, 1]} : vector<8x96xf32> to vector<8x32xf32>
    %250 = vector.extract_strided_slice %238 {offsets = [0, 64], sizes = [8, 32], strides = [1, 1]} : vector<8x96xf32> to vector<8x32xf32>
    %251 = vector.broadcast %19 : vector<1x32xf32> to vector<8x32xf32>
    %252 = arith.addf %250, %251 : vector<8x32xf32>
    %253 = arith.mulf %247, %252 : vector<8x32xf32>
    %254 = arith.addf %249, %253 : vector<8x32xf32>
    %255 = math.tanh %254 : vector<8x32xf32>
    %256 = arith.subf %210, %255 : vector<8x32xf32>
    %257 = arith.mulf %248, %256 : vector<8x32xf32>
    %258 = arith.addf %255, %257 : vector<8x32xf32>
    %c32 = arith.constant 32 : index
    %c0_57 = arith.constant 0 : index
    %259 = vector.load %arg19[%c32, %c0_57] : memref<64x32xf32, #tpu.memory_space<vmem>>, vector<8x32xf32>
    tpu.vector_store %arg19[%c32, %c0_57], %258 {strides = array<i32>} : memref<64x32xf32, #tpu.memory_space<vmem>>, vector<8x32xf32>,
    %260 = vector.extract_strided_slice %8 {offsets = [40, 0], sizes = [8, 96], strides = [1, 1]} : vector<64x96xf32> to vector<8x96xf32>
    %261 = arith.addf %260, %13 : vector<8x96xf32>
    %cst_58 = arith.constant dense<0.000000e+00> : vector<8x96xf32>
    %262 = tpu.matmul %234, %14, %cst_58 {dimension_numbers = #tpu.dot_dimension_numbers<[1], [0], [0], [1], [0, 0, 1, 1], [], []>} : vector<8x32xf32>, vector<32x96xf32>, vector<8x96xf32> -> vector<8x96xf32>
    %263 = vector.extract_strided_slice %261 {offsets = [0, 0], sizes = [8, 64], strides = [1, 1]} : vector<8x96xf32> to vector<8x64xf32>
    %264 = vector.extract_strided_slice %262 {offsets = [0, 0], sizes = [8, 64], strides = [1, 1]} : vector<8x96xf32> to vector<8x64xf32>
    %265 = arith.addf %263, %264 : vector<8x64xf32>
    %266 = arith.negf %265 : vector<8x64xf32>
    %267 = math.exp %266 : vector<8x64xf32>
    %cst_59 = arith.constant 1.000000e+00 : f32
    %268 = vector.broadcast %cst_59 : f32 to vector<8x64xf32>
    %269 = arith.addf %268, %267 : vector<8x64xf32>
    %270 = arith.divf %268, %269 : vector<8x64xf32>
    %271 = vector.extract_strided_slice %270 {offsets = [0, 0], sizes = [8, 32], strides = [1, 1]} : vector<8x64xf32> to vector<8x32xf32>
    %272 = vector.extract_strided_slice %270 {offsets = [0, 32], sizes = [8, 32], strides = [1, 1]} : vector<8x64xf32> to vector<8x32xf32>
    %273 = vector.extract_strided_slice %261 {offsets = [0, 64], sizes = [8, 32], strides = [1, 1]} : vector<8x96xf32> to vector<8x32xf32>
    %274 = vector.extract_strided_slice %262 {offsets = [0, 64], sizes = [8, 32], strides = [1, 1]} : vector<8x96xf32> to vector<8x32xf32>
    %275 = vector.broadcast %15 : vector<1x32xf32> to vector<8x32xf32>
    %276 = arith.addf %274, %275 : vector<8x32xf32>
    %277 = arith.mulf %271, %276 : vector<8x32xf32>
    %278 = arith.addf %273, %277 : vector<8x32xf32>
    %279 = math.tanh %278 : vector<8x32xf32>
    %280 = arith.subf %234, %279 : vector<8x32xf32>
    %281 = arith.mulf %272, %280 : vector<8x32xf32>
    %282 = arith.addf %279, %281 : vector<8x32xf32>
    %cst_60 = arith.constant dense<0.000000e+00> : vector<8x96xf32>
    %283 = tpu.matmul %282, %16, %cst_60 {dimension_numbers = #tpu.dot_dimension_numbers<[1], [0], [0], [1], [0, 0, 1, 1], [], []>} : vector<8x32xf32>, vector<32x96xf32>, vector<8x96xf32> -> vector<8x96xf32>
    %284 = vector.broadcast %17 : vector<1x96xf32> to vector<8x96xf32>
    %285 = arith.addf %283, %284 : vector<8x96xf32>
    %cst_61 = arith.constant dense<0.000000e+00> : vector<8x96xf32>
    %286 = tpu.matmul %258, %18, %cst_61 {dimension_numbers = #tpu.dot_dimension_numbers<[1], [0], [0], [1], [0, 0, 1, 1], [], []>} : vector<8x32xf32>, vector<32x96xf32>, vector<8x96xf32> -> vector<8x96xf32>
    %287 = vector.extract_strided_slice %285 {offsets = [0, 0], sizes = [8, 64], strides = [1, 1]} : vector<8x96xf32> to vector<8x64xf32>
    %288 = vector.extract_strided_slice %286 {offsets = [0, 0], sizes = [8, 64], strides = [1, 1]} : vector<8x96xf32> to vector<8x64xf32>
    %289 = arith.addf %287, %288 : vector<8x64xf32>
    %290 = arith.negf %289 : vector<8x64xf32>
    %291 = math.exp %290 : vector<8x64xf32>
    %cst_62 = arith.constant 1.000000e+00 : f32
    %292 = vector.broadcast %cst_62 : f32 to vector<8x64xf32>
    %293 = arith.addf %292, %291 : vector<8x64xf32>
    %294 = arith.divf %292, %293 : vector<8x64xf32>
    %295 = vector.extract_strided_slice %294 {offsets = [0, 0], sizes = [8, 32], strides = [1, 1]} : vector<8x64xf32> to vector<8x32xf32>
    %296 = vector.extract_strided_slice %294 {offsets = [0, 32], sizes = [8, 32], strides = [1, 1]} : vector<8x64xf32> to vector<8x32xf32>
    %297 = vector.extract_strided_slice %285 {offsets = [0, 64], sizes = [8, 32], strides = [1, 1]} : vector<8x96xf32> to vector<8x32xf32>
    %298 = vector.extract_strided_slice %286 {offsets = [0, 64], sizes = [8, 32], strides = [1, 1]} : vector<8x96xf32> to vector<8x32xf32>
    %299 = vector.broadcast %19 : vector<1x32xf32> to vector<8x32xf32>
    %300 = arith.addf %298, %299 : vector<8x32xf32>
    %301 = arith.mulf %295, %300 : vector<8x32xf32>
    %302 = arith.addf %297, %301 : vector<8x32xf32>
    %303 = math.tanh %302 : vector<8x32xf32>
    %304 = arith.subf %258, %303 : vector<8x32xf32>
    %305 = arith.mulf %296, %304 : vector<8x32xf32>
    %306 = arith.addf %303, %305 : vector<8x32xf32>
    %c40 = arith.constant 40 : index
    %c0_63 = arith.constant 0 : index
    %307 = vector.load %arg19[%c40, %c0_63] : memref<64x32xf32, #tpu.memory_space<vmem>>, vector<8x32xf32>
    tpu.vector_store %arg19[%c40, %c0_63], %306 {strides = array<i32>} : memref<64x32xf32, #tpu.memory_space<vmem>>, vector<8x32xf32>,
    %308 = vector.extract_strided_slice %8 {offsets = [48, 0], sizes = [8, 96], strides = [1, 1]} : vector<64x96xf32> to vector<8x96xf32>
    %309 = arith.addf %308, %13 : vector<8x96xf32>
    %cst_64 = arith.constant dense<0.000000e+00> : vector<8x96xf32>
    %310 = tpu.matmul %282, %14, %cst_64 {dimension_numbers = #tpu.dot_dimension_numbers<[1], [0], [0], [1], [0, 0, 1, 1], [], []>} : vector<8x32xf32>, vector<32x96xf32>, vector<8x96xf32> -> vector<8x96xf32>
    %311 = vector.extract_strided_slice %309 {offsets = [0, 0], sizes = [8, 64], strides = [1, 1]} : vector<8x96xf32> to vector<8x64xf32>
    %312 = vector.extract_strided_slice %310 {offsets = [0, 0], sizes = [8, 64], strides = [1, 1]} : vector<8x96xf32> to vector<8x64xf32>
    %313 = arith.addf %311, %312 : vector<8x64xf32>
    %314 = arith.negf %313 : vector<8x64xf32>
    %315 = math.exp %314 : vector<8x64xf32>
    %cst_65 = arith.constant 1.000000e+00 : f32
    %316 = vector.broadcast %cst_65 : f32 to vector<8x64xf32>
    %317 = arith.addf %316, %315 : vector<8x64xf32>
    %318 = arith.divf %316, %317 : vector<8x64xf32>
    %319 = vector.extract_strided_slice %318 {offsets = [0, 0], sizes = [8, 32], strides = [1, 1]} : vector<8x64xf32> to vector<8x32xf32>
    %320 = vector.extract_strided_slice %318 {offsets = [0, 32], sizes = [8, 32], strides = [1, 1]} : vector<8x64xf32> to vector<8x32xf32>
    %321 = vector.extract_strided_slice %309 {offsets = [0, 64], sizes = [8, 32], strides = [1, 1]} : vector<8x96xf32> to vector<8x32xf32>
    %322 = vector.extract_strided_slice %310 {offsets = [0, 64], sizes = [8, 32], strides = [1, 1]} : vector<8x96xf32> to vector<8x32xf32>
    %323 = vector.broadcast %15 : vector<1x32xf32> to vector<8x32xf32>
    %324 = arith.addf %322, %323 : vector<8x32xf32>
    %325 = arith.mulf %319, %324 : vector<8x32xf32>
    %326 = arith.addf %321, %325 : vector<8x32xf32>
    %327 = math.tanh %326 : vector<8x32xf32>
    %328 = arith.subf %282, %327 : vector<8x32xf32>
    %329 = arith.mulf %320, %328 : vector<8x32xf32>
    %330 = arith.addf %327, %329 : vector<8x32xf32>
    %cst_66 = arith.constant dense<0.000000e+00> : vector<8x96xf32>
    %331 = tpu.matmul %330, %16, %cst_66 {dimension_numbers = #tpu.dot_dimension_numbers<[1], [0], [0], [1], [0, 0, 1, 1], [], []>} : vector<8x32xf32>, vector<32x96xf32>, vector<8x96xf32> -> vector<8x96xf32>
    %332 = vector.broadcast %17 : vector<1x96xf32> to vector<8x96xf32>
    %333 = arith.addf %331, %332 : vector<8x96xf32>
    %cst_67 = arith.constant dense<0.000000e+00> : vector<8x96xf32>
    %334 = tpu.matmul %306, %18, %cst_67 {dimension_numbers = #tpu.dot_dimension_numbers<[1], [0], [0], [1], [0, 0, 1, 1], [], []>} : vector<8x32xf32>, vector<32x96xf32>, vector<8x96xf32> -> vector<8x96xf32>
    %335 = vector.extract_strided_slice %333 {offsets = [0, 0], sizes = [8, 64], strides = [1, 1]} : vector<8x96xf32> to vector<8x64xf32>
    %336 = vector.extract_strided_slice %334 {offsets = [0, 0], sizes = [8, 64], strides = [1, 1]} : vector<8x96xf32> to vector<8x64xf32>
    %337 = arith.addf %335, %336 : vector<8x64xf32>
    %338 = arith.negf %337 : vector<8x64xf32>
    %339 = math.exp %338 : vector<8x64xf32>
    %cst_68 = arith.constant 1.000000e+00 : f32
    %340 = vector.broadcast %cst_68 : f32 to vector<8x64xf32>
    %341 = arith.addf %340, %339 : vector<8x64xf32>
    %342 = arith.divf %340, %341 : vector<8x64xf32>
    %343 = vector.extract_strided_slice %342 {offsets = [0, 0], sizes = [8, 32], strides = [1, 1]} : vector<8x64xf32> to vector<8x32xf32>
    %344 = vector.extract_strided_slice %342 {offsets = [0, 32], sizes = [8, 32], strides = [1, 1]} : vector<8x64xf32> to vector<8x32xf32>
    %345 = vector.extract_strided_slice %333 {offsets = [0, 64], sizes = [8, 32], strides = [1, 1]} : vector<8x96xf32> to vector<8x32xf32>
    %346 = vector.extract_strided_slice %334 {offsets = [0, 64], sizes = [8, 32], strides = [1, 1]} : vector<8x96xf32> to vector<8x32xf32>
    %347 = vector.broadcast %19 : vector<1x32xf32> to vector<8x32xf32>
    %348 = arith.addf %346, %347 : vector<8x32xf32>
    %349 = arith.mulf %343, %348 : vector<8x32xf32>
    %350 = arith.addf %345, %349 : vector<8x32xf32>
    %351 = math.tanh %350 : vector<8x32xf32>
    %352 = arith.subf %306, %351 : vector<8x32xf32>
    %353 = arith.mulf %344, %352 : vector<8x32xf32>
    %354 = arith.addf %351, %353 : vector<8x32xf32>
    %c48 = arith.constant 48 : index
    %c0_69 = arith.constant 0 : index
    %355 = vector.load %arg19[%c48, %c0_69] : memref<64x32xf32, #tpu.memory_space<vmem>>, vector<8x32xf32>
    tpu.vector_store %arg19[%c48, %c0_69], %354 {strides = array<i32>} : memref<64x32xf32, #tpu.memory_space<vmem>>, vector<8x32xf32>,
    %356 = vector.extract_strided_slice %8 {offsets = [56, 0], sizes = [8, 96], strides = [1, 1]} : vector<64x96xf32> to vector<8x96xf32>
    %357 = arith.addf %356, %13 : vector<8x96xf32>
    %cst_70 = arith.constant dense<0.000000e+00> : vector<8x96xf32>
    %358 = tpu.matmul %330, %14, %cst_70 {dimension_numbers = #tpu.dot_dimension_numbers<[1], [0], [0], [1], [0, 0, 1, 1], [], []>} : vector<8x32xf32>, vector<32x96xf32>, vector<8x96xf32> -> vector<8x96xf32>
    %359 = vector.extract_strided_slice %357 {offsets = [0, 0], sizes = [8, 64], strides = [1, 1]} : vector<8x96xf32> to vector<8x64xf32>
    %360 = vector.extract_strided_slice %358 {offsets = [0, 0], sizes = [8, 64], strides = [1, 1]} : vector<8x96xf32> to vector<8x64xf32>
    %361 = arith.addf %359, %360 : vector<8x64xf32>
    %362 = arith.negf %361 : vector<8x64xf32>
    %363 = math.exp %362 : vector<8x64xf32>
    %cst_71 = arith.constant 1.000000e+00 : f32
    %364 = vector.broadcast %cst_71 : f32 to vector<8x64xf32>
    %365 = arith.addf %364, %363 : vector<8x64xf32>
    %366 = arith.divf %364, %365 : vector<8x64xf32>
    %367 = vector.extract_strided_slice %366 {offsets = [0, 0], sizes = [8, 32], strides = [1, 1]} : vector<8x64xf32> to vector<8x32xf32>
    %368 = vector.extract_strided_slice %366 {offsets = [0, 32], sizes = [8, 32], strides = [1, 1]} : vector<8x64xf32> to vector<8x32xf32>
    %369 = vector.extract_strided_slice %357 {offsets = [0, 64], sizes = [8, 32], strides = [1, 1]} : vector<8x96xf32> to vector<8x32xf32>
    %370 = vector.extract_strided_slice %358 {offsets = [0, 64], sizes = [8, 32], strides = [1, 1]} : vector<8x96xf32> to vector<8x32xf32>
    %371 = vector.broadcast %15 : vector<1x32xf32> to vector<8x32xf32>
    %372 = arith.addf %370, %371 : vector<8x32xf32>
    %373 = arith.mulf %367, %372 : vector<8x32xf32>
    %374 = arith.addf %369, %373 : vector<8x32xf32>
    %375 = math.tanh %374 : vector<8x32xf32>
    %376 = arith.subf %330, %375 : vector<8x32xf32>
    %377 = arith.mulf %368, %376 : vector<8x32xf32>
    %378 = arith.addf %375, %377 : vector<8x32xf32>
    %cst_72 = arith.constant dense<0.000000e+00> : vector<8x96xf32>
    %379 = tpu.matmul %378, %16, %cst_72 {dimension_numbers = #tpu.dot_dimension_numbers<[1], [0], [0], [1], [0, 0, 1, 1], [], []>} : vector<8x32xf32>, vector<32x96xf32>, vector<8x96xf32> -> vector<8x96xf32>
    %380 = vector.broadcast %17 : vector<1x96xf32> to vector<8x96xf32>
    %381 = arith.addf %379, %380 : vector<8x96xf32>
    %cst_73 = arith.constant dense<0.000000e+00> : vector<8x96xf32>
    %382 = tpu.matmul %354, %18, %cst_73 {dimension_numbers = #tpu.dot_dimension_numbers<[1], [0], [0], [1], [0, 0, 1, 1], [], []>} : vector<8x32xf32>, vector<32x96xf32>, vector<8x96xf32> -> vector<8x96xf32>
    %383 = vector.extract_strided_slice %381 {offsets = [0, 0], sizes = [8, 64], strides = [1, 1]} : vector<8x96xf32> to vector<8x64xf32>
    %384 = vector.extract_strided_slice %382 {offsets = [0, 0], sizes = [8, 64], strides = [1, 1]} : vector<8x96xf32> to vector<8x64xf32>
    %385 = arith.addf %383, %384 : vector<8x64xf32>
    %386 = arith.negf %385 : vector<8x64xf32>
    %387 = math.exp %386 : vector<8x64xf32>
    %cst_74 = arith.constant 1.000000e+00 : f32
    %388 = vector.broadcast %cst_74 : f32 to vector<8x64xf32>
    %389 = arith.addf %388, %387 : vector<8x64xf32>
    %390 = arith.divf %388, %389 : vector<8x64xf32>
    %391 = vector.extract_strided_slice %390 {offsets = [0, 0], sizes = [8, 32], strides = [1, 1]} : vector<8x64xf32> to vector<8x32xf32>
    %392 = vector.extract_strided_slice %390 {offsets = [0, 32], sizes = [8, 32], strides = [1, 1]} : vector<8x64xf32> to vector<8x32xf32>
    %393 = vector.extract_strided_slice %381 {offsets = [0, 64], sizes = [8, 32], strides = [1, 1]} : vector<8x96xf32> to vector<8x32xf32>
    %394 = vector.extract_strided_slice %382 {offsets = [0, 64], sizes = [8, 32], strides = [1, 1]} : vector<8x96xf32> to vector<8x32xf32>
    %395 = vector.broadcast %19 : vector<1x32xf32> to vector<8x32xf32>
    %396 = arith.addf %394, %395 : vector<8x32xf32>
    %397 = arith.mulf %391, %396 : vector<8x32xf32>
    %398 = arith.addf %393, %397 : vector<8x32xf32>
    %399 = math.tanh %398 : vector<8x32xf32>
    %400 = arith.subf %354, %399 : vector<8x32xf32>
    %401 = arith.mulf %392, %400 : vector<8x32xf32>
    %402 = arith.addf %399, %401 : vector<8x32xf32>
    %c56 = arith.constant 56 : index
    %c0_75 = arith.constant 0 : index
    %403 = vector.load %arg19[%c56, %c0_75] : memref<64x32xf32, #tpu.memory_space<vmem>>, vector<8x32xf32>
    tpu.vector_store %arg19[%c56, %c0_75], %402 {strides = array<i32>} : memref<64x32xf32, #tpu.memory_space<vmem>>, vector<8x32xf32>,
    %c0_76 = arith.constant 0 : index
    %c0_77 = arith.constant 0 : index
    %404 = vector.load %arg1[%c0_76, %c0_77] : memref<64x1xf32, #tpu.memory_space<vmem>>, vector<64x1xf32>
    %cst_78 = arith.constant 0.000000e+00 : f32
    %405 = vector.broadcast %cst_78 : f32 to vector<64x1xf32>
    %406 = arith.cmpf ogt, %404, %405 : vector<64x1xf32>
    %c0_79 = arith.constant 0 : index
    %c0_80 = arith.constant 0 : index
    %407 = vector.load %arg19[%c0_79, %c0_80] : memref<64x32xf32, #tpu.memory_space<vmem>>, vector<64x32xf32>
    %cst_81 = arith.constant 0.000000e+00 : f32
    %408 = vector.shape_cast %406 : vector<64x1xi1> to vector<64x1xi1>
    %409 = vector.broadcast %408 : vector<64x1xi1> to vector<64x32xi1>
    %410 = vector.broadcast %cst_81 : f32 to vector<64x32xf32>
    %411 = arith.select %409, %407, %410 : vector<64x32xi1>, vector<64x32xf32>
    %c0_82 = arith.constant 0 : index
    %c0_83 = arith.constant 0 : index
    %412 = vector.load %arg15[%c0_82, %c0_83] : memref<32x16xf32, #tpu.memory_space<vmem>>, vector<32x16xf32>
    %cst_84 = arith.constant dense<0.000000e+00> : vector<64x16xf32>
    %413 = tpu.matmul %411, %412, %cst_84 {dimension_numbers = #tpu.dot_dimension_numbers<[1], [0], [0], [1], [0, 0, 1, 1], [], []>} : vector<64x32xf32>, vector<32x16xf32>, vector<64x16xf32> -> vector<64x16xf32>
    %c0_85 = arith.constant 0 : index
    %c0_86 = arith.constant 0 : index
    %414 = vector.load %arg16[%c0_85, %c0_86] : memref<1x16xf32, #tpu.memory_space<vmem>>, vector<1x16xf32>
    %415 = vector.broadcast %414 : vector<1x16xf32> to vector<64x16xf32>
    %416 = arith.addf %413, %415 : vector<64x16xf32>
    %cst_87 = arith.constant dense<0xFF800000> : vector<64xf32>
    %417 = vector.multi_reduction <maximumf>, %416, %cst_87 [1] : vector<64x16xf32> to vector<64xf32>
    %418 = vector.shape_cast %417 : vector<64xf32> to vector<64x1xf32>
    %419 = vector.broadcast %418 : vector<64x1xf32> to vector<64x16xf32>
    %420 = arith.subf %416, %419 : vector<64x16xf32>
    %421 = math.exp %420 : vector<64x16xf32>
    %cst_88 = arith.constant dense<0.000000e+00> : vector<64xf32>
    %422 = vector.multi_reduction <add>, %421, %cst_88 [1] : vector<64x16xf32> to vector<64xf32>
    %423 = vector.shape_cast %422 : vector<64xf32> to vector<64x1xf32>
    %424 = math.log %423 : vector<64x1xf32>
    %425 = tpu.iota {dimensions = array<i32: 1>} : vector<64x16xi32>
    %c0_89 = arith.constant 0 : index
    %c0_90 = arith.constant 0 : index
    %426 = vector.load %arg2[%c0_89, %c0_90] : memref<64x1xi32, #tpu.memory_space<vmem>>, vector<64x1xi32>
    %427 = vector.broadcast %426 : vector<64x1xi32> to vector<64x16xi32>
    %428 = arith.cmpi eq, %425, %427 : vector<64x16xi32>
    %cst_91 = arith.constant 0.000000e+00 : f32
    %429 = vector.broadcast %cst_91 : f32 to vector<64x16xf32>
    %430 = arith.select %428, %420, %429 : vector<64x16xi1>, vector<64x16xf32>
    %cst_92 = arith.constant dense<0.000000e+00> : vector<64xf32>
    %431 = vector.multi_reduction <add>, %430, %cst_92 [1] : vector<64x16xf32> to vector<64xf32>
    %432 = vector.shape_cast %431 : vector<64xf32> to vector<64x1xf32>
    %433 = arith.subf %432, %424 : vector<64x1xf32>
    %c0_i32 = arith.constant 0 : i32
    %434 = vector.broadcast %c0_i32 : i32 to vector<64x1xi32>
    %435 = arith.cmpi ne, %426, %434 : vector<64x1xi32>
    %cst_93 = arith.constant 0.000000e+00 : f32
    %436 = vector.broadcast %cst_93 : f32 to vector<64x1xf32>
    %437 = arith.subf %436, %433 : vector<64x1xf32>
    %cst_94 = arith.constant 0.000000e+00 : f32
    %438 = vector.broadcast %cst_94 : f32 to vector<64x1xf32>
    %439 = arith.select %435, %437, %438 : vector<64x1xi1>, vector<64x1xf32>
    %440 = vector.shape_cast %439 : vector<64x1xf32> to vector<1x64x1xf32>
    %cst_95 = arith.constant dense<0.000000e+00> : vector<1xf32>
    %441 = vector.multi_reduction <add>, %440, %cst_95 [1, 2] : vector<1x64x1xf32> to vector<1xf32>
    %442 = vector.shape_cast %441 : vector<1xf32> to vector<1x1x1xf32>
    %443 = vector.extract %442[0, 0, 0] : f32 from vector<1x1x1xf32>
    %444 = arith.extui %435 : vector<64x1xi1> to vector<64x1xi32>
    %445 = arith.sitofp %444 : vector<64x1xi32> to vector<64x1xf32>
    %446 = vector.shape_cast %445 : vector<64x1xf32> to vector<1x64x1xf32>
    %cst_96 = arith.constant dense<0.000000e+00> : vector<1xf32>
    %447 = vector.multi_reduction <add>, %446, %cst_96 [1, 2] : vector<1x64x1xf32> to vector<1xf32>
    %448 = vector.shape_cast %447 : vector<1xf32> to vector<1x1x1xf32>
    %449 = vector.extract %448[0, 0, 0] : f32 from vector<1x1x1xf32>
    %cst_97 = arith.constant 1.000000e+00 : f32
    %450 = arith.maximumf %449, %cst_97 : f32
    %451 = arith.divf %443, %450 : f32
    %452 = vector.broadcast %451 : f32 to vector<1x1xf32>
    %c0_98 = arith.constant 0 : index
    %c0_99 = arith.constant 0 : index
    %453 = vector.load %arg17[%c0_98, %c0_99] : memref<1x1xf32, #tpu.memory_space<vmem>>, vector<1x1xf32>
    tpu.vector_store %arg17[%c0_98, %c0_99], %452 {strides = array<i32>} : memref<1x1xf32, #tpu.memory_space<vmem>>, vector<1x1xf32>,
    %454 = vector.broadcast %418 : vector<64x1xf32> to vector<64x16xf32>
    %455 = arith.cmpf oeq, %416, %454 : vector<64x16xf32>
    %c16_i32 = arith.constant 16 : i32
    %456 = vector.broadcast %c16_i32 : i32 to vector<64x16xi32>
    %457 = arith.select %455, %425, %456 : vector<64x16xi1>, vector<64x16xi32>
    %cst_100 = arith.constant dense<2147483647> : vector<64xi32>
    %458 = vector.multi_reduction <minsi>, %457, %cst_100 [1] : vector<64x16xi32> to vector<64xi32>
    %459 = vector.shape_cast %458 : vector<64xi32> to vector<64x1xi32>
    %c0_101 = arith.constant 0 : index
    %c0_102 = arith.constant 0 : index
    %460 = vector.load %arg18[%c0_101, %c0_102] : memref<64x1xi32, #tpu.memory_space<vmem>>, vector<64x1xi32>
    tpu.vector_store %arg18[%c0_101, %c0_102], %459 {strides = array<i32>} : memref<64x1xi32, #tpu.memory_space<vmem>>, vector<64x1xi32>,
    return
  }
}

</mosaic_0001>

<bundles_post_ra>
// kernel: tpu_custom_call.1
= control target key start
LH: loop header
LB: loop body
LE: loop exit
PB: predicated region body
PF: predicated region fallthrough
CT: control target
= control target key end

     0   :  { %s5185_s0 = inlined_call_operand.vmem [shape: f32[64,8], index: 0, kind: input, shape index: {}]   ;;  %s5186_s1 = inlined_call_operand.vmem [shape: f32[64,1], index: 1, kind: input, shape index: {}]   ;;  %s5187_s2 = inlined_call_operand.vmem [shape: s32[64,1], index: 2, kind: input, shape index: {}]   ;;  %s5188_s3 = inlined_call_operand.vmem [shape: f32[8,16], index: 3, kind: input, shape index: {}]   ;;  %s5189_s4 = inlined_call_operand.vmem [shape: f32[16,32], index: 4, kind: input, shape index: {}]   ;;  %s5190_s5 = inlined_call_operand.vmem [shape: f32[1,32], index: 5, kind: input, shape index: {}]   ;;  %s5191_s6 = inlined_call_operand.vmem [shape: f32[8,96], index: 6, kind: input, shape index: {}]   ;;  %s5192_s7 = inlined_call_operand.vmem [shape: f32[16,96], index: 7, kind: input, shape index: {}]   ;;  %s5193_s8 = inlined_call_operand.vmem [shape: f32[1,96], index: 8, kind: input, shape index: {}]   ;;  %s5194_s9 = inlined_call_operand.vmem [shape: f32[32,96], index: 9, kind: input, shape index: {}]   ;;  %s5195_s10 = inlined_call_operand.vmem [shape: f32[1,32], index: 10, kind: input, shape index: {}]   ;;  %s5196_s11 = inlined_call_operand.vmem [shape: f32[32,96], index: 11, kind: input, shape index: {}]   ;;  %s5197_s12 = inlined_call_operand.vmem [shape: f32[1,96], index: 12, kind: input, shape index: {}]   ;;  %s5198_s13 = inlined_call_operand.vmem [shape: f32[32,96], index: 13, kind: input, shape index: {}]   ;;  %s5199_s14 = inlined_call_operand.vmem [shape: f32[1,32], index: 14, kind: input, shape index: {}]   ;;  %s5200_s15 = inlined_call_operand.vmem [shape: f32[32,16], index: 15, kind: input, shape index: {}]   ;;  %s5201_s16 = inlined_call_operand.vmem [shape: f32[1,16], index: 16, kind: input, shape index: {}]   ;;  %s5202_s17 = inlined_call_operand.hbm [shape: f32[1,1], index: 17, kind: output, shape index: {0}]   ;;  %s5203_s18 = inlined_call_operand.vmem [shape: s32[64,1], index: 18, kind: output, shape index: {1}]  }
   0x1   :  { %5207 = sst [smem:[#allocation6_spill]] %s5185_s0 }
   0x2   :  { %5208 = sst [smem:[#allocation7_spill]] %s5186_s1 }
   0x3   :  { %5209 = sst [smem:[#allocation8_spill]] %s5187_s2 }
   0x4   :  { %v60_v0 = vld [vmem:[%s5189_s4] sm:$0xff]  ;;  %v61_v1 = vld [vmem:[%s5189_s4 + $0x8] sm:$0xff]  ;;  %v4174_v2 = vmov 0.0|0.0   ;;  %vm4175_vm0 = vmmov 0   ;;  %v4176_v4 = vmov 0.0   ;;  %vm152_vm1 = vcmask 64512  }
   0x5   :  { %3844 = vmatprep.subr.bf16.mxu0 %v4174_v2  ;;  %v3845_v3 = vpack.c.bf16 %v61_v1, %v60_v0  ;;  %3536 = vmatprep.mubr.msk.f32.mxu0 %vm4175_vm0, %v4176_v4  ;;  %v282_v5 = vld [vmem:[%s5192_s7] sm:$0xff]  ;;  %v283_v6 = vld [vmem:[%s5192_s7 + $0x8] sm:$0xff]  ;;  %s5210_s23 = sld [smem:[#allocation6_spill]]  ;;  %vm69_vm2 = vcmask 130048   ;;  %v363_v16 = vld [vmem:[%s5194_s9 + $0x10] sm:$0xff] }
   0x6   :  { %v151_v7 = vld [vmem:[%s5191_s6] sm:$0xff]  ;;  %v3848_v12 = vpack.c.bf16 %v283_v6, %v282_v5  ;;  %v362_v13 = vld [vmem:[%s5194_s9 + $0x8] sm:$0xff]  ;;  %v364_v17 = vld [vmem:[%s5194_s9 + $0x18] sm:$0xff] }
   0x7   :  { %3539 = vmatprep.subr.mxu1 %v151_v7  ;;  %v361_v10 = vld [vmem:[%s5194_s9] sm:$0xff]  ;;  %3846 = vmatpush3.bf16.msra.mxu0 %v3845_v3  ;;  %v372_v19 = vld [vmem:[%s5198_s13 + $0x8] sm:$0xff]  ;;  %v4342_v22 = vpack.c.bf16 %v364_v17, %v363_v16 }
   0x8   :  { %v59_v11 = vld [vmem:[%s5188_s3] sm:$0xff]  ;;  %3540 = vmatpush3.msra.mxu1 %v151_v7  ;;  %3847 = vmatprep.subr.bf16.mxu0 %v4174_v2  ;;  %v4313_v14 = vpack.c.bf16 %v362_v13, %v361_v10 }
   0x9   :  { %3850 = vmatprep.subr.bf16.mxu1 %v4174_v2  ;;  %v371_v18 = vld [vmem:[%s5198_s13] sm:$0xff] }
   0xa   :  { %3537 = vmatmul.mubr.msk.f32.vlgmr.msra.gmra.mrb[0].mxu0 %vm69_vm2, %v59_v11  ;;  %v4344_v23 = vpack.c.bf16 %v372_v19, %v371_v18 }
   0xb   :  { %v143_v8 = vld [vmem:[%s5210_s23] sm:$0xff]  ;;  %v144_v9 = vld [vmem:[%s5210_s23 + $0x8] sm:$0xff]  ;;  %v145_v15 = vld [vmem:[%s5210_s23 + $0x10] sm:$0xff]  ;;  %3849 = vmatpush3.bf16.msra.mxu0 %v3848_v12  ;;  %3557 = vmatprep.mubr.msk.f32.mxu0 %vm4175_vm0, %v4176_v4 }
   0xc   :  { %3541 = vmatprep.mubr.msk.f32.mxu1 %vm152_vm1, %v143_v8  ;;  %v146_v20 = vld [vmem:[%s5210_s23 + $0x18] sm:$0xff]  ;;  %v147_v21 = vld [vmem:[%s5210_s23 + $0x20] sm:$0xff] }
   0xd   :  { %3542 = vmatmul.mubr.msk.f32.vlgmr.msra.gmra.mrb[0].mxu1 %vm152_vm1, %v144_v9 }
   0xe   :  { %3852 = vmatpush3.bf16.msra.mxu1 %v4313_v14 }
   0xf   :  { %24 = vsyncpa [#allocation4], 0  ;;  %3544 = vmatprep.mubr.msk.f32.mxu1 %vm152_vm1, %v145_v15  ;;  %3853 = vmatprep.subr.bf16.mxu1 %v4174_v2  ;;  %v148_v24 = vld [vmem:[%s5210_s23 + $0x28] sm:$0xff]  ;;  %v149_v25 = vld [vmem:[%s5210_s23 + $0x30] sm:$0xff]  ;;  %s4177_s21 = smov 64   ;;  %vm377_vm3 = vcmask 261120  }
  0x10   :  { %3862 = vmatprep.subr.bf16.mxu0 %v4174_v2  ;;  %3558 = vmatmul.mubr.msk.f32.vlgmr.msra.gmra.mrb[2].mxu0 %vm69_vm2, %v59_v11  ;;  %v150_v26 = vld [vmem:[%s5210_s23 + $0x38] sm:$0xff]  ;;  %v373_v27 = vld [vmem:[%s5198_s13 + $0x10] sm:$0xff]  ;;  %v3327_v30 = vld [vmem:[%s5195_s10] ss:$0 sm:$0xff]  ;;  %s4179_s29 = smov 96   ;;  %s5211_s1 = sld [smem:[#allocation7_spill]] }
  0x11   :  { %3545 = vmatmul.mubr.msk.f32.gmra.mrb[2].mxu1 %vm152_vm1, %v146_v20  ;;  %3864 = vmatpush3.bf16.msra.mxu0 %v4344_v23  ;;  %v374_v28 = vld [vmem:[%s5198_s13 + $0x18] sm:$0xff]  ;;  %v3313_v31 = vld [vmem:[%s5190_s5] ss:$0 sm:$0xff]  ;;  %s4178_s5 = smov 32   ;;  %v367_v12 = vld [vmem:[%s5196_s11 + $0x8] sm:$0xff]  ;;  %s5212_s19 = sld [smem:[#allocation8_spill]] }
  0x12   :  { %3547 = vmatprep.mubr.msk.f32.mxu1 %vm152_vm1, %v147_v21  ;;  %3855 = vmatpush3.bf16.msra.mxu1 %v4342_v22  ;;  %v4378_v29 = vpack.c.bf16 %v374_v28, %v373_v27  ;;  %v3323_v37 = vld [vmem:[%s5193_s8] ss:$0 sm:$0xff]  ;;  %v368_v13 = vld [vmem:[%s5196_s11 + $0x10] sm:$0xff]  ;;  %v369_v16 = vld [vmem:[%s5196_s11 + $0x18] sm:$0xff] }
  0x13   :  { %3865 = vmatprep.subr.bf16.mxu0 %v4174_v2  ;;  %3590 = vmatprep.mubr.msk.f32.mxu0 %vm4175_vm0, %v4176_v4  ;;  %v366_v11 = vld [vmem:[%s5196_s11] sm:$0xff]  ;;  %v4441_v17 = vpack.c.bf16 %v369_v16, %v368_v13 }
  0x14   :  { %3856 = vmatprep.subr.bf16.mxu1 %v4174_v2  ;;  %463 = vrot.lane.b32.xlu0 %v3327_v30, %s4177_s21  ;;  %v4435_v15 = vpack.c.bf16 %v367_v12, %v366_v11  ;;  %v3332_v20 = vld [vmem:[%s5199_s14] ss:$0 sm:$0xff] }
  0x15   :  { %3548 = vmatmul.mubr.msk.f32.gmra.mrb[4].mxu1 %vm152_vm1, %v148_v24  ;;  %3867 = vmatpush3.bf16.msra.mxu0 %v4378_v29  ;;  %v4478_v28 = vld [vmem:[%s5197_s12] ss:$0 sm:$0xff] }
  0x16   :  { %3550 = vmatprep.mubr.msk.f32.mxu1 %vm152_vm1, %v149_v25  ;;  %3874 = vmatprep.subr.bf16.mxu0 %v4174_v2 }
  0x19   :  { %3551 = vmatmul.mubr.msk.f32.gmra.mrb[6].mxu1 %vm152_vm1, %v150_v26 }
  0x1a   :  { %3568 = vmatprep.mubr.msk.f32.mxu1 %vm4175_vm0, %v4176_v4 }
  0x86   :  { %v4416_v55 = vpop.permute.xlu0 %463 }
  0xdd   :  { %v139_v33 = vpop.f32.mrb[0].mxu0 }
  0xde   :  { %v4389_v35 = vadd.f32 %v3313_v31, %v139_v33  ;;  %v3538_v36 = vpop.f32.mrb[1].mxu0 }
  0xe0   :  { %v3543_v32 = vpop.f32.mrb[0].mxu1  ;;  %3569 = vmatmul.mubr.msk.f32.vlgmr.msra.gmra.mrb[8].mxu1 %vm377_vm3, %v4389_v35  ;;  %3591 = vmatmul.mubr.msk.f32.vlgmr.msra.gmra.mrb[4].mxu0 %vm377_vm3, %v4389_v35 }
  0xe1   :  { %v243_v34 = vpop.f32.mrb[1].mxu1  ;;  %3579 = vmatprep.mubr.msk.f32.mxu1 %vm4175_vm0, %v4176_v4  ;;  %3612 = vmatprep.mubr.msk.f32.mxu0 %vm4175_vm0, %v4176_v4 }
  0xe2   :  { %3858 = vmatpush3.bf16.msra.mxu1 %v4435_v15  ;;  %3876 = vmatpush3.bf16.msra.mxu0 %v4435_v15 }
  0xe3   :  { %v357_v39 = vpop.f32.mrb[2].mxu0  ;;  %3859 = vmatprep.subr.bf16.mxu1 %v4174_v2  ;;  %3877 = vmatprep.subr.bf16.mxu0 %v4174_v2 }
  0xe4   :  { %v3546_v38 = vpop.f32.mrb[2].mxu1  ;;  %v358_v41 = vadd.f32 %v3323_v37, %v357_v39  ;;  %v3559_v42 = vpop.f32.mrb[3].mxu0 }
  0xe5   :  { %v253_v40 = vpop.f32.mrb[3].mxu1 }
  0xe6   :  { %v4402_v43 = vadd.f32 %v3543_v32, %v358_v41  ;;  %v376_v44 = vadd.f32 %v358_v41, %v243_v34  ;;  %v4404_v45 = vadd.f32 %v3546_v38, %v358_v41  ;;  %v4406_v46 = vadd.f32 %v358_v41, %v253_v40  ;;  %3861 = vmatpush3.bf16.msra.mxu1 %v4441_v17 }
  0xe7   :  { %3868 = vmatprep.subr.bf16.mxu1 %v4174_v2  ;;  %3879 = vmatpush3.bf16.msra.mxu0 %v4441_v17 }
  0xe8   :  { %v3549_v47 = vpop.f32.mrb[4].mxu1  ;;  %3886 = vmatprep.subr.bf16.mxu0 %v4174_v2 }
  0xe9   :  { %v4408_v48 = vadd.f32 %v3549_v47, %v358_v41  ;;  %v263_v49 = vpop.f32.mrb[5].mxu1 }
  0xea   :  { %v4410_v50 = vadd.f32 %v358_v41, %v263_v49 }
  0xec   :  { %v3552_v51 = vpop.f32.mrb[6].mxu1 }
  0xed   :  { %v4412_v52 = vadd.f32 %v3552_v51, %v358_v41  ;;  %v273_v53 = vpop.f32.mrb[7].mxu1 }
  0xee   :  { %v4414_v54 = vadd.f32 %v358_v41, %v273_v53 }
 0x1b3   :  { %v447_v56 = vpop.f32.mrb[8].mxu1  ;;  %v4418_v57 = vpop.f32.mrb[4].mxu0 }
 0x1b4   :  { %v466_v58 = vadd.f32 %v4416_v55, %v447_v56  ;;  %v3570_v59 = vpop.f32.mrb[9].mxu1  ;;  %v3592_v60 = vpop.f32.mrb[5].mxu0  ;;  %v451_v61 = vadd.f32 %v447_v56, %v376_v44 }
 0x1b6   :  { %468 = vrot.lane.b32.xlu0 %v466_v58, %s4177_s21  ;;  %v3326_v62 = vmul.f32 -1.442695, %v451_v61 }
 0x1b8   :  { %4019 = vpow2.f32 %v3326_v62 }
 0x1c2   :  { %v4020_v63 = vpop.eup %4019 }
 0x1c3   :  { %v455_v0 = vadd.f32 1.0, %v4020_v63 }
 0x1c5   :  { %4021 = vrcp.f32 %v455_v0 }
 0x1cf   :  { %v4022_v1 = vpop.eup %4021 }
 0x228   :  { %v469_v3 = vpop.permute.xlu0 %468 }
 0x229   :  { %v471_v5 = vmul.f32 %v4022_v1, %v469_v3 }
 0x22b   :  { %473 = vrot.lane.b32.xlu1 %v471_v5, %s4177_s21 }
 0x29d   :  { %v474_v6 = vpop.permute.xlu1 %473 }
 0x29e   :  { %v476_v7 = vadd.f32 %v474_v6, %v376_v44 }
 0x2a0   :  { %4023 = vtanh.f32 %v476_v7 }
 0x2aa   :  { %v4024_v8 = vpop.eup %4023 }
 0x2ab   :  { %479 = vrot.lane.b32.xlu1 %v4024_v8, %s4177_s21 }
 0x31d   :  { %v480_v9 = vpop.permute.xlu1 %479 }
 0x31e   :  { %v482_v10 = vsub.f32 %v4389_v35, %v480_v9 }
 0x320   :  { %484 = vrot.lane.b32.xlu0 %v482_v10, %s4178_s5 }
 0x392   :  { %v485_v18 = vpop.permute.xlu0 %484 }
 0x393   :  { %v487_v19 = vmul.f32 %v4022_v1, %v485_v18 }
 0x395   :  { %489 = vrot.lane.b32.xlu1 %v487_v19, %s4178_s5 }
 0x399   :  { %656 = vrot.lane.b32.xlu1 %v3332_v20, %s4177_s21 }
 0x407   :  { %v490_v21 = vpop.permute.xlu1 %489 }
 0x408   :  { %v492_v24 = vadd.f32 %v4024_v8, %v490_v21 }
 0x40a   :  { %500 = vrot.lane.b32.xlu0 %v492_v24, %s4177_s21 }
 0x40b   :  { %v4456_v25 = vpop.permute.xlu1 %656 }
 0x40c   :  { %v659_v26 = vadd.f32 %v4456_v25, %v4418_v57 }
 0x40e   :  { %661 = vrot.lane.b32.xlu0 %v659_v26, %s4177_s21 }
 0x47c   :  { %v501_v27 = vpop.permute.xlu0 %500 }
 0x47d   :  { %3580 = vmatmul.mubr.msk.f32.vlgmr.msra.gmra.mrb[10].mxu1 %vm377_vm3, %v501_v27 }
 0x47e   :  { %3870 = vmatpush3.bf16.msra.mxu1 %v4313_v14  ;;  %3601 = vmatprep.mubr.msk.f32.mxu1 %vm4175_vm0, %v4176_v4 }
 0x47f   :  { %3871 = vmatprep.subr.bf16.mxu1 %v4174_v2 }
 0x480   :  { %v662_v42 = vpop.permute.xlu0 %661 }
 0x482   :  { %3873 = vmatpush3.bf16.msra.mxu1 %v4342_v22 }
 0x483   :  { %3880 = vmatprep.subr.bf16.mxu1 %v4174_v2 }
 0x485   :  { %3602 = vmatmul.mubr.msk.f32.vlgmr.msra.gmra.mrb[12].mxu1 %vm377_vm3, %v501_v27 }
 0x486   :  { %3882 = vmatpush3.bf16.msra.mxu1 %v4344_v23  ;;  %3623 = vmatprep.mubr.msk.f32.mxu1 %vm4175_vm0, %v4176_v4 }
 0x487   :  { %3883 = vmatprep.subr.bf16.mxu1 %v4174_v2 }
 0x48a   :  { %3885 = vmatpush3.bf16.msra.mxu1 %v4378_v29 }
 0x48b   :  { %3892 = vmatprep.subr.bf16.mxu1 %v4174_v2 }
 0x550   :  { %v570_v30 = vpop.f32.mrb[10].mxu1 }
 0x551   :  { %v571_v31 = vadd.f32 %v4478_v28, %v570_v30  ;;  %v3581_v32 = vpop.f32.mrb[11].mxu1 }
 0x553   :  { %v644_v33 = vadd.f32 %v4418_v57, %v571_v31 }
 0x555   :  { %v3331_v34 = vmul.f32 -1.442695, %v644_v33 }
 0x557   :  { %4025 = vpow2.f32 %v3331_v34 }
 0x558   :  { %v758_v36 = vpop.f32.mrb[12].mxu1 }
 0x559   :  { %v769_v37 = vadd.f32 %v758_v36, %v4416_v55  ;;  %v3603_v38 = vpop.f32.mrb[13].mxu1  ;;  %v762_v47 = vadd.f32 %v758_v36, %v4402_v43 }
 0x55b   :  { %771 = vrot.lane.b32.xlu1 %v769_v37, %s4177_s21  ;;  %v3334_v49 = vmul.f32 -1.442695, %v762_v47 }
 0x561   :  { %v4026_v39 = vpop.eup %4025 }
 0x562   :  { %v648_v40 = vadd.f32 1.0, %v4026_v39 }
 0x564   :  { %4027 = vrcp.f32 %v648_v40 }
 0x565   :  { %4029 = vpow2.f32 %v3334_v49 }
 0x56e   :  { %v4028_v41 = vpop.eup %4027 }
 0x56f   :  { %v664_v44 = vmul.f32 %v4028_v41, %v662_v42  ;;  %v4030_v51 = vpop.eup %4029 }
 0x570   :  { %v766_v53 = vadd.f32 1.0, %v4030_v51 }
 0x571   :  { %666 = vrot.lane.b32.xlu0 %v664_v44, %s4177_s21 }
 0x572   :  { %4031 = vrcp.f32 %v766_v53 }
 0x57c   :  { %v4032_v56 = vpop.eup %4031 }
 0x5cd   :  { %v772_v57 = vpop.permute.xlu1 %771 }
 0x5ce   :  { %v774_v58 = vmul.f32 %v4032_v56, %v772_v57 }
 0x5d0   :  { %776 = vrot.lane.b32.xlu1 %v774_v58, %s4177_s21 }
 0x5e3   :  { %v667_v59 = vpop.permute.xlu0 %666 }
 0x5e4   :  { %v669_v60 = vadd.f32 %v667_v59, %v571_v31 }
 0x5e6   :  { %4033 = vtanh.f32 %v669_v60 }
 0x5f0   :  { %v4034_v61 = vpop.eup %4033 }
 0x5f1   :  { %672 = vrot.lane.b32.xlu0 %v4034_v61, %s4177_s21 }
 0x642   :  { %v777_v62 = vpop.permute.xlu1 %776 }
 0x643   :  { %v779_v63 = vadd.f32 %v777_v62, %v4402_v43 }
 0x645   :  { %4035 = vtanh.f32 %v779_v63 }
 0x64f   :  { %v4036_v0 = vpop.eup %4035 }
 0x650   :  { %v781_v1 = vsub.f32 %v492_v24, %v4036_v0 }
 0x652   :  { %783 = vrot.lane.b32.xlu1 %v781_v1, %s4179_s29 }
 0x663   :  { %v673_v3 = vpop.permute.xlu0 %672 }
 0x664   :  { %v675_v5 = vsub.f32 %v4389_v35, %v673_v3 }
 0x666   :  { %677 = vrot.lane.b32.xlu0 %v675_v5, %s4178_s5 }
 0x6c4   :  { %v784_v6 = vpop.permute.xlu1 %783 }
 0x6c5   :  { %v786_v7 = vmul.f32 %v4032_v56, %v784_v6 }
 0x6c7   :  { %788 = vrot.lane.b32.xlu1 %v786_v7, %s4178_s5 }
 0x6d8   :  { %v678_v8 = vpop.permute.xlu0 %677 }
 0x6d9   :  { %v680_v9 = vmul.f32 %v4028_v41, %v678_v8 }
 0x6db   :  { %682 = vrot.lane.b32.xlu0 %v680_v9, %s4178_s5 }
 0x739   :  { %v789_v43 = vpop.permute.xlu1 %788 }
 0x73a   :  { %v4494_v10 = vadd.f32 %v4036_v0, %v789_v43 }
 0x73c   :  { %793 = vrot.lane.b32.xlu1 %v4494_v10, %s4177_s21 }
 0x74d   :  { %v683_v11 = vpop.permute.xlu0 %682 }
 0x74e   :  { %v4498_v12 = vadd.f32 %v4034_v61, %v683_v11 }
 0x750   :  { %687 = vrot.lane.b32.xlu0 %v4498_v12, %s4177_s21 }
 0x7ae   :  { %v794_v35 = vpop.permute.xlu1 %793 }
 0x7af   :  { %3613 = vmatmul.mubr.msk.f32.vlgmr.msra.gmra.mrb[6].mxu0 %vm377_vm3, %v794_v35 }
 0x7b0   :  { %3888 = vmatpush3.bf16.msra.mxu0 %v4313_v14  ;;  %3634 = vmatprep.mubr.msk.f32.mxu0 %vm4175_vm0, %v4176_v4 }
 0x7b1   :  { %3889 = vmatprep.subr.bf16.mxu0 %v4174_v2 }
 0x7b4   :  { %3891 = vmatpush3.bf16.msra.mxu0 %v4342_v22 }
 0x7b5   :  { %3898 = vmatprep.subr.bf16.mxu0 %v4174_v2 }
 0x7b7   :  { %3635 = vmatmul.mubr.msk.f32.vlgmr.msra.gmra.mrb[8].mxu0 %vm377_vm3, %v794_v35 }
 0x7b8   :  { %3900 = vmatpush3.bf16.msra.mxu0 %v4344_v23  ;;  %3656 = vmatprep.mubr.msk.f32.mxu0 %vm4175_vm0, %v4176_v4 }
 0x7b9   :  { %3901 = vmatprep.subr.bf16.mxu0 %v4174_v2 }
 0x7bc   :  { %3903 = vmatpush3.bf16.msra.mxu0 %v4378_v29 }
 0x7bd   :  { %3910 = vmatprep.subr.bf16.mxu0 %v4174_v2 }
 0x7c2   :  { %v688_v13 = vpop.permute.xlu0 %687 }
 0x7c3   :  { %690 = vst.msk [vmem:[#allocation2] sm:$0xff] %vm377_vm3, %v688_v13  ;;  %3624 = vmatmul.mubr.msk.f32.vlgmr.msra.gmra.mrb[14].mxu1 %vm377_vm3, %v688_v13 }
 0x7c4   :  { %3894 = vmatpush3.bf16.msra.mxu1 %v4435_v15  ;;  %3645 = vmatprep.mubr.msk.f32.mxu1 %vm4175_vm0, %v4176_v4 }
 0x7c5   :  { %3895 = vmatprep.subr.bf16.mxu1 %v4174_v2 }
 0x7c8   :  { %3897 = vmatpush3.bf16.msra.mxu1 %v4441_v17 }
 0x7c9   :  { %3904 = vmatprep.subr.bf16.mxu1 %v4174_v2 }
 0x882   :  { %v863_v16 = vpop.f32.mrb[6].mxu0 }
 0x883   :  { %v3614_v18 = vpop.f32.mrb[7].mxu0  ;;  %v864_v32 = vadd.f32 %v4478_v28, %v863_v16 }
 0x88a   :  { %v1041_v19 = vpop.f32.mrb[8].mxu0 }
 0x88b   :  { %v1052_v20 = vadd.f32 %v1041_v19, %v4416_v55  ;;  %v3636_v21 = vpop.f32.mrb[9].mxu0  ;;  %v1045_v30 = vadd.f32 %v1041_v19, %v4406_v46 }
 0x88d   :  { %1054 = vrot.lane.b32.xlu1 %v1052_v20, %s4177_s21  ;;  %v3339_v31 = vmul.f32 -1.442695, %v1045_v30 }
 0x88f   :  { %4037 = vpow2.f32 %v3339_v31 }
 0x896   :  { %v935_v24 = vpop.f32.mrb[14].mxu1 }
 0x897   :  { %v946_v26 = vadd.f32 %v935_v24, %v4456_v25  ;;  %v3625_v27 = vpop.f32.mrb[15].mxu1  ;;  %v939_v33 = vadd.f32 %v935_v24, %v864_v32 }
 0x899   :  { %948 = vrot.lane.b32.xlu0 %v946_v26, %s4177_s21  ;;  %v3337_v34 = vmul.f32 -1.442695, %v939_v33  ;;  %v4038_v36 = vpop.eup %4037 }
 0x89a   :  { %v1049_v37 = vadd.f32 1.0, %v4038_v36 }
 0x89b   :  { %4039 = vpow2.f32 %v3337_v34 }
 0x89c   :  { %4041 = vrcp.f32 %v1049_v37 }
 0x8a5   :  { %v4040_v38 = vpop.eup %4039 }
 0x8a6   :  { %v943_v39 = vadd.f32 1.0, %v4040_v38  ;;  %v4042_v40 = vpop.eup %4041 }
 0x8a8   :  { %4043 = vrcp.f32 %v943_v39 }
 0x8b2   :  { %v4044_v44 = vpop.eup %4043 }
 0x8ff   :  { %v1055_v41 = vpop.permute.xlu1 %1054 }
 0x900   :  { %v1057_v42 = vmul.f32 %v4042_v40, %v1055_v41 }
 0x902   :  { %1059 = vrot.lane.b32.xlu1 %v1057_v42, %s4177_s21 }
 0x90b   :  { %v949_v47 = vpop.permute.xlu0 %948 }
 0x90c   :  { %v951_v49 = vmul.f32 %v4044_v44, %v949_v47 }
 0x90e   :  { %953 = vrot.lane.b32.xlu0 %v951_v49, %s4177_s21 }
 0x974   :  { %v1060_v51 = vpop.permute.xlu1 %1059 }
 0x975   :  { %v1062_v53 = vadd.f32 %v1060_v51, %v4406_v46 }
 0x977   :  { %4045 = vtanh.f32 %v1062_v53 }
 0x980   :  { %v954_v56 = vpop.permute.xlu0 %953 }
 0x981   :  { %v4046_v57 = vpop.eup %4045  ;;  %v956_v58 = vadd.f32 %v954_v56, %v864_v32 }
 0x982   :  { %v1064_v59 = vsub.f32 %v4494_v10, %v4046_v57 }
 0x983   :  { %4047 = vtanh.f32 %v956_v58 }
 0x984   :  { %1066 = vrot.lane.b32.xlu1 %v1064_v59, %s4179_s29 }
 0x98d   :  { %v4048_v60 = vpop.eup %4047 }
 0x98e   :  { %v958_v61 = vsub.f32 %v4498_v12, %v4048_v60 }
 0x990   :  { %960 = vrot.lane.b32.xlu0 %v958_v61, %s4179_s29 }
 0x9f6   :  { %v1067_v62 = vpop.permute.xlu1 %1066 }
 0x9f7   :  { %v1069_v63 = vmul.f32 %v4042_v40, %v1067_v62 }
 0x9f9   :  { %1071 = vrot.lane.b32.xlu1 %v1069_v63, %s4178_s5 }
 0xa02   :  { %v961_v0 = vpop.permute.xlu0 %960 }
 0xa03   :  { %v963_v46 = vmul.f32 %v4044_v44, %v961_v0 }
 0xa05   :  { %965 = vrot.lane.b32.xlu0 %v963_v46, %s4178_s5 }
 0xa6b   :  { %v1072_v1 = vpop.permute.xlu1 %1071 }
 0xa6c   :  { %v4539_v3 = vadd.f32 %v4046_v57, %v1072_v1 }
 0xa6e   :  { %1076 = vrot.lane.b32.xlu1 %v4539_v3, %s4177_s21 }
 0xa77   :  { %v966_v5 = vpop.permute.xlu0 %965 }
 0xa78   :  { %v4543_v6 = vadd.f32 %v4048_v60, %v966_v5 }
 0xa7a   :  { %970 = vrot.lane.b32.xlu0 %v4543_v6, %s4177_s21 }
 0xae0   :  { %v1077_v7 = vpop.permute.xlu1 %1076 }
 0xae1   :  { %3646 = vmatmul.mubr.msk.f32.vlgmr.msra.gmra.mrb[16].mxu1 %vm377_vm3, %v1077_v7 }
 0xae2   :  { %3906 = vmatpush3.bf16.msra.mxu1 %v4313_v14  ;;  %3667 = vmatprep.mubr.msk.f32.mxu1 %vm4175_vm0, %v4176_v4 }
 0xae3   :  { %3907 = vmatprep.subr.bf16.mxu1 %v4174_v2 }
 0xae6   :  { %3909 = vmatpush3.bf16.msra.mxu1 %v4342_v22 }
 0xae7   :  { %3916 = vmatprep.subr.bf16.mxu1 %v4174_v2 }
 0xae9   :  { %3668 = vmatmul.mubr.msk.f32.vlgmr.msra.gmra.mrb[18].mxu1 %vm377_vm3, %v1077_v7 }
 0xaea   :  { %3918 = vmatpush3.bf16.msra.mxu1 %v4344_v23  ;;  %3689 = vmatprep.mubr.msk.f32.mxu1 %vm4175_vm0, %v4176_v4 }
 0xaeb   :  { %3919 = vmatprep.subr.bf16.mxu1 %v4174_v2 }
 0xaec   :  { %v971_v8 = vpop.permute.xlu0 %970 }
 0xaed   :  { %973 = vst.msk [vmem:[#allocation2 + $0x8] sm:$0xff] %vm377_vm3, %v971_v8  ;;  %3657 = vmatmul.mubr.msk.f32.vlgmr.msra.gmra.mrb[10].mxu0 %vm377_vm3, %v971_v8 }
 0xaee   :  { %3912 = vmatpush3.bf16.msra.mxu0 %v4435_v15  ;;  %3678 = vmatprep.mubr.msk.f32.mxu0 %vm4175_vm0, %v4176_v4 }
 0xaef   :  { %3913 = vmatprep.subr.bf16.mxu0 %v4174_v2  ;;  %3921 = vmatpush3.bf16.msra.mxu1 %v4378_v29 }
 0xaf0   :  { %3928 = vmatprep.subr.bf16.mxu1 %v4174_v2 }
 0xaf2   :  { %3915 = vmatpush3.bf16.msra.mxu0 %v4441_v17 }
 0xaf3   :  { %3922 = vmatprep.subr.bf16.mxu0 %v4174_v2 }
 0xbb4   :  { %v1146_v9 = vpop.f32.mrb[16].mxu1 }
 0xbb5   :  { %v3647_v43 = vpop.f32.mrb[17].mxu1  ;;  %v1147_v19 = vadd.f32 %v4478_v28, %v1146_v9 }
 0xbbc   :  { %v1324_v10 = vpop.f32.mrb[18].mxu1 }
 0xbbd   :  { %v1335_v11 = vadd.f32 %v1324_v10, %v4416_v55  ;;  %v3669_v12 = vpop.f32.mrb[19].mxu1  ;;  %v1328_v18 = vadd.f32 %v1324_v10, %v4404_v45 }
 0xbbf   :  { %1337 = vrot.lane.b32.xlu0 %v1335_v11, %s4177_s21  ;;  %v3344_v20 = vmul.f32 -1.442695, %v1328_v18 }
 0xbc0   :  { %v1218_v35 = vpop.f32.mrb[10].mxu0 }
 0xbc1   :  { %v1229_v13 = vadd.f32 %v1218_v35, %v4456_v25  ;;  %v3658_v16 = vpop.f32.mrb[11].mxu0  ;;  %v1222_v21 = vadd.f32 %v1218_v35, %v1147_v19  ;;  %4049 = vpow2.f32 %v3344_v20 }
 0xbc3   :  { %1231 = vrot.lane.b32.xlu1 %v1229_v13, %s4177_s21  ;;  %v3342_v24 = vmul.f32 -1.442695, %v1222_v21 }
 0xbc5   :  { %4051 = vpow2.f32 %v3342_v24 }
 0xbcb   :  { %v4050_v26 = vpop.eup %4049 }
 0xbcc   :  { %v1332_v27 = vadd.f32 1.0, %v4050_v26 }
 0xbce   :  { %4053 = vrcp.f32 %v1332_v27 }
 0xbcf   :  { %v4052_v30 = vpop.eup %4051 }
 0xbd0   :  { %v1226_v31 = vadd.f32 1.0, %v4052_v30 }
 0xbd2   :  { %4055 = vrcp.f32 %v1226_v31 }
 0xbd8   :  { %v4054_v32 = vpop.eup %4053 }
 0xbdc   :  { %v4056_v36 = vpop.eup %4055 }
 0xc31   :  { %v1338_v33 = vpop.permute.xlu0 %1337 }
 0xc32   :  { %v1340_v34 = vmul.f32 %v4054_v32, %v1338_v33 }
 0xc34   :  { %1342 = vrot.lane.b32.xlu0 %v1340_v34, %s4177_s21 }
 0xc35   :  { %v1232_v37 = vpop.permute.xlu1 %1231 }
 0xc36   :  { %v1234_v38 = vmul.f32 %v4056_v36, %v1232_v37 }
 0xc38   :  { %1236 = vrot.lane.b32.xlu1 %v1234_v38, %s4177_s21 }
 0xca6   :  { %v1343_v39 = vpop.permute.xlu0 %1342 }
 0xca7   :  { %v1345_v40 = vadd.f32 %v1343_v39, %v4404_v45 }
 0xca9   :  { %4057 = vtanh.f32 %v1345_v40 }
 0xcaa   :  { %v1237_v41 = vpop.permute.xlu1 %1236 }
 0xcab   :  { %v1239_v42 = vadd.f32 %v1237_v41, %v1147_v19 }
 0xcad   :  { %4059 = vtanh.f32 %v1239_v42 }
 0xcb3   :  { %v4058_v44 = vpop.eup %4057 }
 0xcb4   :  { %v1347_v47 = vsub.f32 %v4539_v3, %v4058_v44 }
 0xcb6   :  { %1349 = vrot.lane.b32.xlu0 %v1347_v47, %s4179_s29 }
 0xcb7   :  { %v4060_v49 = vpop.eup %4059 }
 0xcb8   :  { %v1241_v51 = vsub.f32 %v4543_v6, %v4060_v49 }
 0xcba   :  { %1243 = vrot.lane.b32.xlu1 %v1241_v51, %s4179_s29 }
 0xd28   :  { %v1350_v53 = vpop.permute.xlu0 %1349 }
 0xd29   :  { %v1352_v56 = vmul.f32 %v4054_v32, %v1350_v53 }
 0xd2b   :  { %1354 = vrot.lane.b32.xlu0 %v1352_v56, %s4178_s5 }
 0xd2c   :  { %v1244_v57 = vpop.permute.xlu1 %1243 }
 0xd2d   :  { %v1246_v45 = vmul.f32 %v4056_v36, %v1244_v57 }
 0xd2f   :  { %1248 = vrot.lane.b32.xlu1 %v1246_v45, %s4178_s5 }
 0xd9d   :  { %v1355_v58 = vpop.permute.xlu0 %1354 }
 0xd9e   :  { %v4584_v59 = vadd.f32 %v4058_v44, %v1355_v58 }
 0xda0   :  { %1359 = vrot.lane.b32.xlu0 %v4584_v59, %s4177_s21 }
 0xda1   :  { %v1249_v60 = vpop.permute.xlu1 %1248 }
 0xda2   :  { %v1251_v61 = vadd.f32 %v4060_v49, %v1249_v60 }
 0xda4   :  { %1253 = vrot.lane.b32.xlu1 %v1251_v61, %s4177_s21 }
 0xe12   :  { %v1360_v62 = vpop.permute.xlu0 %1359 }
 0xe13   :  { %3679 = vmatmul.mubr.msk.f32.vlgmr.msra.gmra.mrb[12].mxu0 %vm377_vm3, %v1360_v62 }
 0xe14   :  { %3924 = vmatpush3.bf16.msra.mxu0 %v4313_v14  ;;  %3700 = vmatprep.mubr.msk.f32.mxu0 %vm4175_vm0, %v4176_v4 }
 0xe15   :  { %3925 = vmatprep.subr.bf16.mxu0 %v4174_v2 }
 0xe16   :  { %v1254_v63 = vpop.permute.xlu1 %1253 }
 0xe17   :  { %1256 = vst.msk [vmem:[#allocation2 + $0x10] sm:$0xff] %vm377_vm3, %v1254_v63  ;;  %3690 = vmatmul.mubr.msk.f32.vlgmr.msra.gmra.mrb[20].mxu1 %vm377_vm3, %v1254_v63 }
 0xe18   :  { %3927 = vmatpush3.bf16.msra.mxu0 %v4342_v22  ;;  %3930 = vmatpush3.bf16.msra.mxu1 %v4435_v15 }
 0xe19   :  { %3934 = vmatprep.subr.bf16.mxu0 %v4174_v2  ;;  %3931 = vmatprep.subr.bf16.mxu1 %v4174_v2 }
 0xe1a   :  { %3711 = vmatprep.mubr.msk.f32.mxu1 %vm4175_vm0, %v4176_v4 }
 0xe1b   :  { %3701 = vmatmul.mubr.msk.f32.vlgmr.msra.gmra.mrb[14].mxu0 %vm377_vm3, %v1360_v62 }
 0xe1c   :  { %3936 = vmatpush3.bf16.msra.mxu0 %v4344_v23  ;;  %3933 = vmatpush3.bf16.msra.mxu1 %v4441_v17 }
 0xe1d   :  { %3937 = vmatprep.subr.bf16.mxu0 %v4174_v2  ;;  %3722 = vmatprep.mubr.msk.f32.mxu0 %vm4175_vm0, %v4176_v4 }
 0xe1e   :  { %3940 = vmatprep.subr.bf16.mxu1 %v4174_v2 }
 0xe20   :  { %3939 = vmatpush3.bf16.msra.mxu0 %v4378_v29 }
 0xe21   :  { %3946 = vmatprep.subr.bf16.mxu0 %v4174_v2 }
 0xee6   :  { %v1429_v0 = vpop.f32.mrb[12].mxu0 }
 0xee7   :  { %v3680_v46 = vpop.f32.mrb[13].mxu0  ;;  %v1430_v9 = vadd.f32 %v4478_v28, %v1429_v0 }
 0xeea   :  { %v1501_v1 = vpop.f32.mrb[20].mxu1 }
 0xeeb   :  { %v1512_v3 = vadd.f32 %v1501_v1, %v4456_v25  ;;  %v3691_v5 = vpop.f32.mrb[21].mxu1  ;;  %v1505_v43 = vadd.f32 %v1501_v1, %v1430_v9 }
 0xeed   :  { %1514 = vrot.lane.b32.xlu1 %v1512_v3, %s4177_s21  ;;  %v3347_v10 = vmul.f32 -1.442695, %v1505_v43 }
 0xeee   :  { %v1607_v6 = vpop.f32.mrb[14].mxu0 }
 0xeef   :  { %v1618_v7 = vadd.f32 %v1607_v6, %v4416_v55  ;;  %v3702_v8 = vpop.f32.mrb[15].mxu0  ;;  %v1611_v11 = vadd.f32 %v1607_v6, %v4410_v50  ;;  %4061 = vpow2.f32 %v3347_v10 }
 0xef1   :  { %1620 = vrot.lane.b32.xlu0 %v1618_v7, %s4177_s21  ;;  %v3349_v12 = vmul.f32 -1.442695, %v1611_v11 }
 0xef3   :  { %4063 = vpow2.f32 %v3349_v12 }
 0xef9   :  { %v4062_v35 = vpop.eup %4061 }
 0xefa   :  { %v1509_v13 = vadd.f32 1.0, %v4062_v35 }
 0xefc   :  { %4065 = vrcp.f32 %v1509_v13 }
 0xefd   :  { %v4064_v16 = vpop.eup %4063 }
 0xefe   :  { %v1615_v18 = vadd.f32 1.0, %v4064_v16 }
 0xf00   :  { %4067 = vrcp.f32 %v1615_v18 }
 0xf06   :  { %v4066_v19 = vpop.eup %4065 }
 0xf0a   :  { %v4068_v24 = vpop.eup %4067 }
 0xf5f   :  { %v1515_v20 = vpop.permute.xlu1 %1514 }
 0xf60   :  { %v1517_v21 = vmul.f32 %v4066_v19, %v1515_v20 }
 0xf62   :  { %1519 = vrot.lane.b32.xlu1 %v1517_v21, %s4177_s21 }
 0xf63   :  { %v1621_v26 = vpop.permute.xlu0 %1620 }
 0xf64   :  { %v1623_v27 = vmul.f32 %v4068_v24, %v1621_v26 }
 0xf66   :  { %1625 = vrot.lane.b32.xlu0 %v1623_v27, %s4177_s21 }
 0xfd4   :  { %v1520_v30 = vpop.permute.xlu1 %1519 }
 0xfd5   :  { %v1522_v31 = vadd.f32 %v1520_v30, %v1430_v9 }
 0xfd7   :  { %4069 = vtanh.f32 %v1522_v31 }
 0xfd8   :  { %v1626_v32 = vpop.permute.xlu0 %1625 }
 0xfd9   :  { %v1628_v33 = vadd.f32 %v1626_v32, %v4410_v50 }
 0xfdb   :  { %4071 = vtanh.f32 %v1628_v33 }
 0xfe1   :  { %v4070_v34 = vpop.eup %4069 }
 0xfe2   :  { %v1524_v36 = vsub.f32 %v1251_v61, %v4070_v34 }
 0xfe4   :  { %1526 = vrot.lane.b32.xlu1 %v1524_v36, %s4179_s29 }
 0xfe5   :  { %v4072_v37 = vpop.eup %4071 }
 0xfe6   :  { %v1630_v38 = vsub.f32 %v4584_v59, %v4072_v37 }
 0xfe8   :  { %1632 = vrot.lane.b32.xlu0 %v1630_v38, %s4179_s29 }
0x1056   :  { %v1527_v39 = vpop.permute.xlu1 %1526 }
0x1057   :  { %v1529_v40 = vmul.f32 %v4066_v19, %v1527_v39 }
0x1059   :  { %1531 = vrot.lane.b32.xlu1 %v1529_v40, %s4178_s5 }
0x105a   :  { %v1633_v41 = vpop.permute.xlu0 %1632 }
0x105b   :  { %v1635_v42 = vmul.f32 %v4068_v24, %v1633_v41 }
0x105d   :  { %1637 = vrot.lane.b32.xlu0 %v1635_v42, %s4178_s5 }
0x10cb   :  { %v1532_v44 = vpop.permute.xlu1 %1531 }
0x10cc   :  { %v4625_v50 = vadd.f32 %v4070_v34, %v1532_v44 }
0x10ce   :  { %1536 = vrot.lane.b32.xlu1 %v4625_v50, %s4177_s21 }
0x10cf   :  { %v1638_v47 = vpop.permute.xlu0 %1637 }
0x10d0   :  { %v4629_v49 = vadd.f32 %v4072_v37, %v1638_v47 }
0x10d2   :  { %1642 = vrot.lane.b32.xlu0 %v4629_v49, %s4177_s21 }
0x1140   :  { %v1537_v51 = vpop.permute.xlu1 %1536 }
0x1141   :  { %1539 = vst.msk [vmem:[#allocation2 + $0x18] sm:$0xff] %vm377_vm3, %v1537_v51  ;;  %3723 = vmatmul.mubr.msk.f32.vlgmr.msra.gmra.mrb[16].mxu0 %vm377_vm3, %v1537_v51 }
0x1142   :  { %3948 = vmatpush3.bf16.msra.mxu0 %v4435_v15  ;;  %3744 = vmatprep.mubr.msk.f32.mxu0 %vm4175_vm0, %v4176_v4 }
0x1143   :  { %3949 = vmatprep.subr.bf16.mxu0 %v4174_v2 }
0x1144   :  { %v1643_v53 = vpop.permute.xlu0 %1642 }
0x1145   :  { %3712 = vmatmul.mubr.msk.f32.vlgmr.msra.gmra.mrb[22].mxu1 %vm377_vm3, %v1643_v53 }
0x1146   :  { %3942 = vmatpush3.bf16.msra.mxu1 %v4313_v14  ;;  %3733 = vmatprep.mubr.msk.f32.mxu1 %vm4175_vm0, %v4176_v4 }
0x1147   :  { %3943 = vmatprep.subr.bf16.mxu1 %v4174_v2  ;;  %3951 = vmatpush3.bf16.msra.mxu0 %v4441_v17 }
0x1148   :  { %3958 = vmatprep.subr.bf16.mxu0 %v4174_v2 }
0x114a   :  { %3945 = vmatpush3.bf16.msra.mxu1 %v4342_v22 }
0x114b   :  { %3952 = vmatprep.subr.bf16.mxu1 %v4174_v2 }
0x114d   :  { %3734 = vmatmul.mubr.msk.f32.vlgmr.msra.gmra.mrb[24].mxu1 %vm377_vm3, %v1643_v53 }
0x114e   :  { %3954 = vmatpush3.bf16.msra.mxu1 %v4344_v23  ;;  %3755 = vmatprep.mubr.msk.f32.mxu1 %vm4175_vm0, %v4176_v4 }
0x114f   :  { %3955 = vmatprep.subr.bf16.mxu1 %v4174_v2 }
0x1152   :  { %3957 = vmatpush3.bf16.msra.mxu1 %v4378_v29 }
0x1153   :  { %3964 = vmatprep.subr.bf16.mxu1 %v4174_v2 }
0x1214   :  { %v1784_v56 = vpop.f32.mrb[16].mxu0 }
0x1215   :  { %v1795_v57 = vadd.f32 %v1784_v56, %v4456_v25  ;;  %v3724_v45 = vpop.f32.mrb[17].mxu0 }
0x1217   :  { %1797 = vrot.lane.b32.xlu1 %v1795_v57, %s4177_s21 }
0x1218   :  { %v1712_v58 = vpop.f32.mrb[22].mxu1 }
0x1219   :  { %v3713_v59 = vpop.f32.mrb[23].mxu1  ;;  %v1713_v63 = vadd.f32 %v4478_v28, %v1712_v58 }
0x121b   :  { %v1788_v0 = vadd.f32 %v1784_v56, %v1713_v63 }
0x121d   :  { %v3352_v46 = vmul.f32 -1.442695, %v1788_v0 }
0x121f   :  { %4073 = vpow2.f32 %v3352_v46 }
0x1220   :  { %v1890_v60 = vpop.f32.mrb[24].mxu1 }
0x1221   :  { %v1901_v61 = vadd.f32 %v1890_v60, %v4416_v55  ;;  %v3735_v62 = vpop.f32.mrb[25].mxu1  ;;  %v1894_v1 = vadd.f32 %v1890_v60, %v4408_v48 }
0x1223   :  { %1903 = vrot.lane.b32.xlu0 %v1901_v61, %s4177_s21  ;;  %v3354_v3 = vmul.f32 -1.442695, %v1894_v1 }
0x1225   :  { %4075 = vpow2.f32 %v3354_v3 }
0x1229   :  { %v4074_v5 = vpop.eup %4073 }
0x122a   :  { %v1792_v6 = vadd.f32 1.0, %v4074_v5 }
0x122c   :  { %4077 = vrcp.f32 %v1792_v6 }
0x122f   :  { %v4076_v7 = vpop.eup %4075 }
0x1230   :  { %v1898_v8 = vadd.f32 1.0, %v4076_v7 }
0x1232   :  { %4079 = vrcp.f32 %v1898_v8 }
0x1236   :  { %v4078_v9 = vpop.eup %4077 }
0x123c   :  { %v4080_v11 = vpop.eup %4079 }
0x1289   :  { %v1798_v43 = vpop.permute.xlu1 %1797 }
0x128a   :  { %v1800_v10 = vmul.f32 %v4078_v9, %v1798_v43 }
0x128c   :  { %1802 = vrot.lane.b32.xlu1 %v1800_v10, %s4177_s21 }
0x1295   :  { %v1904_v12 = vpop.permute.xlu0 %1903 }
0x1296   :  { %v1906_v35 = vmul.f32 %v4080_v11, %v1904_v12 }
0x1298   :  { %1908 = vrot.lane.b32.xlu0 %v1906_v35, %s4177_s21 }
0x12fe   :  { %v1803_v13 = vpop.permute.xlu1 %1802 }
0x12ff   :  { %v1805_v16 = vadd.f32 %v1803_v13, %v1713_v63 }
0x1301   :  { %4081 = vtanh.f32 %v1805_v16 }
0x130a   :  { %v1909_v18 = vpop.permute.xlu0 %1908 }
0x130b   :  { %v4082_v19 = vpop.eup %4081  ;;  %v1911_v20 = vadd.f32 %v1909_v18, %v4408_v48 }
0x130c   :  { %v1807_v21 = vsub.f32 %v4625_v50, %v4082_v19 }
0x130d   :  { %4083 = vtanh.f32 %v1911_v20 }
0x130e   :  { %1809 = vrot.lane.b32.xlu1 %v1807_v21, %s4179_s29 }
0x1317   :  { %v4084_v24 = vpop.eup %4083 }
0x1318   :  { %v1913_v26 = vsub.f32 %v4629_v49, %v4084_v24 }
0x131a   :  { %1915 = vrot.lane.b32.xlu0 %v1913_v26, %s4179_s29 }
0x1380   :  { %v1810_v27 = vpop.permute.xlu1 %1809 }
0x1381   :  { %v1812_v30 = vmul.f32 %v4078_v9, %v1810_v27 }
0x1383   :  { %1814 = vrot.lane.b32.xlu1 %v1812_v30, %s4178_s5 }
0x138c   :  { %v1916_v31 = vpop.permute.xlu0 %1915 }
0x138d   :  { %v1918_v32 = vmul.f32 %v4080_v11, %v1916_v31 }
0x138f   :  { %1920 = vrot.lane.b32.xlu0 %v1918_v32, %s4178_s5 }
0x13f5   :  { %v1815_v33 = vpop.permute.xlu1 %1814 }
0x13f6   :  { %v1817_v48 = vadd.f32 %v4082_v19, %v1815_v33 }
0x13f8   :  { %1819 = vrot.lane.b32.xlu1 %v1817_v48, %s4177_s21 }
0x1401   :  { %v1921_v34 = vpop.permute.xlu0 %1920 }
0x1402   :  { %v4671_v36 = vadd.f32 %v4084_v24, %v1921_v34 }
0x1404   :  { %1925 = vrot.lane.b32.xlu0 %v4671_v36, %s4177_s21 }
0x146a   :  { %v1820_v37 = vpop.permute.xlu1 %1819 }
0x146b   :  { %1822 = vst.msk [vmem:[#allocation2 + $0x20] sm:$0xff] %vm377_vm3, %v1820_v37  ;;  %3756 = vmatmul.mubr.msk.f32.vlgmr.msra.gmra.mrb[26].mxu1 %vm377_vm3, %v1820_v37 }
0x146c   :  { %3966 = vmatpush3.bf16.msra.mxu1 %v4435_v15  ;;  %3777 = vmatprep.mubr.msk.f32.mxu1 %vm4175_vm0, %v4176_v4 }
0x146d   :  { %3967 = vmatprep.subr.bf16.mxu1 %v4174_v2 }
0x1470   :  { %3969 = vmatpush3.bf16.msra.mxu1 %v4441_v17 }
0x1471   :  { %3976 = vmatprep.subr.bf16.mxu1 %v4174_v2 }
0x1476   :  { %v1926_v38 = vpop.permute.xlu0 %1925 }
0x1477   :  { %3745 = vmatmul.mubr.msk.f32.vlgmr.msra.gmra.mrb[18].mxu0 %vm377_vm3, %v1926_v38 }
0x1478   :  { %3960 = vmatpush3.bf16.msra.mxu0 %v4313_v14  ;;  %3766 = vmatprep.mubr.msk.f32.mxu0 %vm4175_vm0, %v4176_v4 }
0x1479   :  { %3961 = vmatprep.subr.bf16.mxu0 %v4174_v2 }
0x147c   :  { %3963 = vmatpush3.bf16.msra.mxu0 %v4342_v22 }
0x147d   :  { %3970 = vmatprep.subr.bf16.mxu0 %v4174_v2 }
0x147f   :  { %3767 = vmatmul.mubr.msk.f32.vlgmr.msra.gmra.mrb[20].mxu0 %vm377_vm3, %v1926_v38 }
0x1480   :  { %3972 = vmatpush3.bf16.msra.mxu0 %v4344_v23  ;;  %3788 = vmatprep.mubr.msk.f32.mxu0 %vm4175_vm0, %v4176_v4 }
0x1481   :  { %3973 = vmatprep.subr.bf16.mxu0 %v4174_v2 }
0x1484   :  { %3975 = vmatpush3.bf16.msra.mxu0 %v4378_v29 }
0x1485   :  { %3982 = vmatprep.subr.bf16.mxu0 %v4174_v2 }
0x153e   :  { %v2067_v39 = vpop.f32.mrb[26].mxu1 }
0x153f   :  { %v2078_v40 = vadd.f32 %v2067_v39, %v4456_v25  ;;  %v3757_v41 = vpop.f32.mrb[27].mxu1 }
0x1541   :  { %2080 = vrot.lane.b32.xlu1 %v2078_v40, %s4177_s21 }
0x154a   :  { %v1995_v42 = vpop.f32.mrb[18].mxu0 }
0x154b   :  { %v3746_v44 = vpop.f32.mrb[19].mxu0  ;;  %v1996_v51 = vadd.f32 %v4478_v28, %v1995_v42 }
0x154d   :  { %v2071_v53 = vadd.f32 %v2067_v39, %v1996_v51 }
0x154f   :  { %v3357_v56 = vmul.f32 -1.442695, %v2071_v53 }
0x1551   :  { %4085 = vpow2.f32 %v3357_v56 }
0x1552   :  { %v2173_v50 = vpop.f32.mrb[20].mxu0 }
0x1553   :  { %v2184_v47 = vadd.f32 %v2173_v50, %v4416_v55  ;;  %v3768_v49 = vpop.f32.mrb[21].mxu0  ;;  %v2177_v45 = vadd.f32 %v2173_v50, %v4414_v54 }
0x1555   :  { %2186 = vrot.lane.b32.xlu0 %v2184_v47, %s4177_s21  ;;  %v3359_v59 = vmul.f32 -1.442695, %v2177_v45 }
0x155b   :  { %v4086_v57 = vpop.eup %4085 }
0x155c   :  { %v2075_v58 = vadd.f32 1.0, %v4086_v57 }
0x155e   :  { %4087 = vrcp.f32 %v2075_v58 }
0x155f   :  { %4089 = vpow2.f32 %v3359_v59 }
0x1568   :  { %v4088_v60 = vpop.eup %4087 }
0x1569   :  { %v4090_v63 = vpop.eup %4089 }
0x156a   :  { %v2181_v0 = vadd.f32 1.0, %v4090_v63 }
0x156c   :  { %4091 = vrcp.f32 %v2181_v0 }
0x1576   :  { %v4092_v46 = vpop.eup %4091 }
0x15b3   :  { %v2081_v61 = vpop.permute.xlu1 %2080 }
0x15b4   :  { %v2083_v62 = vmul.f32 %v4088_v60, %v2081_v61 }
0x15b6   :  { %2085 = vrot.lane.b32.xlu1 %v2083_v62, %s4177_s21 }
0x15c7   :  { %v2187_v1 = vpop.permute.xlu0 %2186 }
0x15c8   :  { %v2189_v3 = vmul.f32 %v4092_v46, %v2187_v1 }
0x15ca   :  { %2191 = vrot.lane.b32.xlu0 %v2189_v3, %s4177_s21 }
0x1628   :  { %v2086_v5 = vpop.permute.xlu1 %2085 }
0x1629   :  { %v2088_v6 = vadd.f32 %v2086_v5, %v1996_v51 }
0x162b   :  { %4093 = vtanh.f32 %v2088_v6 }
0x1635   :  { %v4094_v7 = vpop.eup %4093 }
0x1636   :  { %v2090_v8 = vsub.f32 %v1817_v48, %v4094_v7 }
0x1638   :  { %2092 = vrot.lane.b32.xlu1 %v2090_v8, %s4179_s29 }
0x163c   :  { %v2192_v9 = vpop.permute.xlu0 %2191 }
0x163d   :  { %v2194_v43 = vadd.f32 %v2192_v9, %v4414_v54 }
0x163f   :  { %4095 = vtanh.f32 %v2194_v43 }
0x1649   :  { %v4096_v10 = vpop.eup %4095 }
0x164a   :  { %v2196_v11 = vsub.f32 %v4671_v36, %v4096_v10 }
0x164c   :  { %2198 = vrot.lane.b32.xlu0 %v2196_v11, %s4179_s29 }
0x16aa   :  { %v2093_v12 = vpop.permute.xlu1 %2092 }
0x16ab   :  { %v2095_v35 = vmul.f32 %v4088_v60, %v2093_v12 }
0x16ad   :  { %2097 = vrot.lane.b32.xlu1 %v2095_v35, %s4178_s5 }
0x16be   :  { %v2199_v13 = vpop.permute.xlu0 %2198 }
0x16bf   :  { %v2201_v16 = vmul.f32 %v4092_v46, %v2199_v13 }
0x16c1   :  { %2203 = vrot.lane.b32.xlu0 %v2201_v16, %s4178_s5 }
0x171f   :  { %v2098_v18 = vpop.permute.xlu1 %2097 }
0x1720   :  { %v2100_v19 = vadd.f32 %v4094_v7, %v2098_v18  ;;  %v4149_v7 = vld [vmem:[%s5197_s12] ss:$0 sm:$0xff] }
0x1722   :  { %2102 = vrot.lane.b32.xlu1 %v2100_v19, %s4177_s21 }
0x1733   :  { %v2204_v20 = vpop.permute.xlu0 %2203 }
0x1734   :  { %v4712_v54 = vadd.f32 %v4096_v10, %v2204_v20 }
0x1736   :  { %2208 = vrot.lane.b32.xlu0 %v4712_v54, %s4177_s21 }
0x1794   :  { %v2103_v21 = vpop.permute.xlu1 %2102 }
0x1795   :  { %2105 = vst.msk [vmem:[#allocation2 + $0x28] sm:$0xff] %vm377_vm3, %v2103_v21  ;;  %3789 = vmatmul.mubr.msk.f32.vlgmr.msra.gmra.mrb[22].mxu0 %vm377_vm3, %v2103_v21  ;;  %v2674_v21 = vld [vmem:[%s5211_s1 + $0x10] sm:$0xff] }
0x1796   :  { %3984 = vmatpush3.bf16.msra.mxu0 %v4435_v15  ;;  %3810 = vmatprep.mubr.msk.f32.mxu0 %vm4175_vm0, %v4176_v4  ;;  %vm2682_vm5 = vcmp.gt.f32.partialorder %v2674_v21, 0.0 }
0x1797   :  { %3985 = vmatprep.subr.bf16.mxu0 %v4174_v2 }
0x179a   :  { %3987 = vmatpush3.bf16.msra.mxu0 %v4441_v17 }
0x17a8   :  { %v2209_v24 = vpop.permute.xlu0 %2208 }
0x17a9   :  { %3778 = vmatmul.mubr.msk.f32.vlgmr.msra.gmra.mrb[28].mxu1 %vm377_vm3, %v2209_v24 }
0x17aa   :  { %3978 = vmatpush3.bf16.msra.mxu1 %v4313_v14  ;;  %3799 = vmatprep.mubr.msk.f32.mxu1 %vm4175_vm0, %v4176_v4 }
0x17ab   :  { %3979 = vmatprep.subr.bf16.mxu1 %v4174_v2 }
0x17ae   :  { %3981 = vmatpush3.bf16.msra.mxu1 %v4342_v22 }
0x17af   :  { %3988 = vmatprep.subr.bf16.mxu1 %v4174_v2 }
0x17b1   :  { %3800 = vmatmul.mubr.msk.f32.vlgmr.msra.gmra.mrb[30].mxu1 %vm377_vm3, %v2209_v24 }
0x17b2   :  { %3990 = vmatpush3.bf16.msra.mxu1 %v4344_v23  ;;  %3821 = vmatprep.mubr.msk.f32.mxu1 %vm4175_vm0, %v4176_v4 }
0x17b3   :  { %3991 = vmatprep.subr.bf16.mxu1 %v4174_v2 }
0x17b6   :  { %3993 = vmatpush3.bf16.msra.mxu1 %v4378_v29 }
0x1868   :  { %v2350_v14 = vpop.f32.mrb[22].mxu0 }
0x1869   :  { %v2361_v15 = vadd.f32 %v2350_v14, %v4456_v25  ;;  %v3790_v17 = vpop.f32.mrb[23].mxu0 }
0x186a   :  { %v2677_v17 = vld [vmem:[%s5211_s1 + $0x28] sm:$0xff] }
0x186b   :  { %2363 = vrot.lane.b32.xlu1 %v2361_v15, %s4177_s21  ;;  %vm2685_vm7 = vcmp.gt.f32.partialorder %v2677_v17, 0.0 }
0x187c   :  { %v2278_v22 = vpop.f32.mrb[28].mxu1 }
0x187d   :  { %v3779_v26 = vpop.f32.mrb[29].mxu1  ;;  %v2279_v23 = vadd.f32 %v4478_v28, %v2278_v22 }
0x187f   :  { %v2354_v32 = vadd.f32 %v2350_v14, %v2279_v23  ;;  %v2675_v14 = vld [vmem:[%s5211_s1 + $0x18] sm:$0xff] }
0x1880   :  { %vm2683_vm6 = vcmp.gt.f32.partialorder %v2675_v14, 0.0 }
0x1881   :  { %v3362_v2 = vmul.f32 -1.442695, %v2354_v32  ;;  %v2747_v32 = vld [vmem:[%s5200_s15 + $0x18] sm:$0xff] }
0x1883   :  { %4097 = vpow2.f32 %v3362_v2 }
0x1884   :  { %v2456_v27 = vpop.f32.mrb[30].mxu1 }
0x1885   :  { %v2467_v30 = vadd.f32 %v2456_v27, %v4416_v55  ;;  %v3801_v31 = vpop.f32.mrb[31].mxu1  ;;  %v2460_v48 = vadd.f32 %v2456_v27, %v4412_v52  ;;  %v2744_v27 = vld [vmem:[%s5200_s15] sm:$0xff] }
0x1886   :  { %v2746_v31 = vld [vmem:[%s5200_s15 + $0x10] sm:$0xff] }
0x1887   :  { %2469 = vrot.lane.b32.xlu0 %v2467_v30, %s4177_s21  ;;  %v3364_v34 = vmul.f32 -1.442695, %v2460_v48  ;;  %v2745_v30 = vld [vmem:[%s5200_s15 + $0x8] sm:$0xff]  ;;  %v3998_v2 = vpack.c.bf16 %v2747_v32, %v2746_v31  ;;  %v4857_v31 = vld [vmem:[%s5212_s19 + $0x20] sm:$0xff] }
0x1888   :  { %v4869_v32 = vld [vmem:[%s5212_s19 + $0x28] sm:$0xff] }
0x188d   :  { %v4098_v29 = vpop.eup %4097 }
0x188e   :  { %v2358_v33 = vadd.f32 1.0, %v4098_v29  ;;  %v2673_v29 = vld [vmem:[%s5211_s1 + $0x8] sm:$0xff] }
0x188f   :  { %vm2681_vm8 = vcmp.gt.f32.partialorder %v2673_v29, 0.0 }
0x1890   :  { %4099 = vrcp.f32 %v2358_v33 }
0x1891   :  { %4101 = vpow2.f32 %v3364_v34  ;;  %v2676_v34 = vld [vmem:[%s5211_s1 + $0x20] sm:$0xff] }
0x1892   :  { %vm2684_vm9 = vcmp.gt.f32.partialorder %v2676_v34, 0.0 }
0x189a   :  { %v4100_v36 = vpop.eup %4099 }
0x189b   :  { %v4102_v55 = vpop.eup %4101 }
0x189c   :  { %v2464_v39 = vadd.f32 1.0, %v4102_v55  ;;  %v2679_v55 = vld [vmem:[%s5211_s1 + $0x38] sm:$0xff] }
0x189d   :  { %vm2687_vm11 = vcmp.gt.f32.partialorder %v2679_v55, 0.0 }
0x189e   :  { %4103 = vrcp.f32 %v2464_v39 }
0x18a8   :  { %v4104_v40 = vpop.eup %4103 }
0x18dd   :  { %v2364_v37 = vpop.permute.xlu1 %2363 }
0x18de   :  { %v2366_v38 = vmul.f32 %v4100_v36, %v2364_v37  ;;  %v2678_v37 = vld [vmem:[%s5211_s1 + $0x30] sm:$0xff] }
0x18df   :  { %vm2686_vm10 = vcmp.gt.f32.partialorder %v2678_v37, 0.0  ;;  %v4883_v37 = vld [vmem:[%s5212_s19 + $0x30] sm:$0xff] }
0x18e0   :  { %2368 = vrot.lane.b32.xlu1 %v2366_v38, %s4177_s21 }
0x18f9   :  { %v2470_v28 = vpop.permute.xlu0 %2469 }
0x18fa   :  { %v2472_v41 = vmul.f32 %v4104_v40, %v2470_v28 }
0x18fc   :  { %2474 = vrot.lane.b32.xlu0 %v2472_v41, %s4177_s21  ;;  %v2688_v41 = vld [vmem:[#allocation2] sm:$0xff] }
0x1952   :  { %v2369_v42 = vpop.permute.xlu1 %2368 }
0x1953   :  { %v2371_v44 = vadd.f32 %v2369_v42, %v2279_v23  ;;  %v3994_v23 = vpack.c.bf16 %v2745_v30, %v2744_v27  ;;  %v4845_v27 = vld [vmem:[%s5212_s19 + $0x10] sm:$0xff]  ;;  %v4850_v30 = vld [vmem:[%s5212_s19] sm:$0xff] }
0x1955   :  { %4105 = vtanh.f32 %v2371_v44  ;;  %3995 = vmatprep.subr.bf16.mxu0 %v3994_v23 }
0x195f   :  { %v4106_v50 = vpop.eup %4105 }
0x1960   :  { %v2373_v47 = vsub.f32 %v2100_v19, %v4106_v50  ;;  %v2672_v19 = vld [vmem:[%s5211_s1] sm:$0xff] }
0x1961   :  { %vm2680_vm4 = vcmp.gt.f32.partialorder %v2672_v19, 0.0 }
0x1962   :  { %2375 = vrot.lane.b32.xlu1 %v2373_v47, %s4179_s29 }
0x196e   :  { %v2475_v49 = vpop.permute.xlu0 %2474 }
0x196f   :  { %v2477_v51 = vadd.f32 %v2475_v49, %v4412_v52 }
0x1971   :  { %4107 = vtanh.f32 %v2477_v51 }
0x197b   :  { %v4108_v53 = vpop.eup %4107 }
0x197c   :  { %v2479_v56 = vsub.f32 %v4712_v54, %v4108_v53 }
0x197e   :  { %2481 = vrot.lane.b32.xlu0 %v2479_v56, %s4179_s29  ;;  %v2690_v56 = vld [vmem:[#allocation2 + $0x10] sm:$0xff] }
0x19d4   :  { %v2376_v57 = vpop.permute.xlu1 %2375 }
0x19d5   :  { %v2378_v45 = vmul.f32 %v4100_v36, %v2376_v57 }
0x19d7   :  { %2380 = vrot.lane.b32.xlu1 %v2378_v45, %s4178_s5 }
0x19f0   :  { %v2482_v58 = vpop.permute.xlu0 %2481 }
0x19f1   :  { %v2484_v59 = vmul.f32 %v4104_v40, %v2482_v58 }
0x19f3   :  { %2486 = vrot.lane.b32.xlu0 %v2484_v59, %s4178_s5 }
0x1a49   :  { %v2381_v60 = vpop.permute.xlu1 %2380 }
0x1a4a   :  { %v2383_v61 = vadd.f32 %v4106_v50, %v2381_v60  ;;  %v2691_v60 = vld [vmem:[#allocation2 + $0x18] sm:$0xff] }
0x1a4c   :  { %2385 = vrot.lane.b32.xlu1 %v2383_v61, %s4177_s21 }
0x1a65   :  { %v2487_v62 = vpop.permute.xlu0 %2486 }
0x1a66   :  { %v2489_v52 = vadd.f32 %v4108_v53, %v2487_v62  ;;  %v2689_v53 = vld [vmem:[#allocation2 + $0x8] sm:$0xff] }
0x1a68   :  { %2491 = vrot.lane.b32.xlu0 %v2489_v52, %s4177_s21 }
0x1abe   :  { %v2386_v63 = vpop.permute.xlu1 %2385 }
0x1abf   :  { %2388 = vst.msk [vmem:[#allocation2 + $0x30] sm:$0xff] %vm377_vm3, %v2386_v63  ;;  %3822 = vmatmul.mubr.msk.f32.vlgmr.msra.gmra.mrb[32].mxu1 %vm377_vm3, %v2386_v63 }
0x1ada   :  { %v2492_v0 = vpop.permute.xlu0 %2491 }
0x1adb   :  { %3811 = vmatmul.mubr.msk.f32.vlgmr.msra.gmra.mrb[24].mxu0 %vm377_vm3, %v2492_v0  ;;  %v2693_v0 = vld [vmem:[#allocation2 + $0x28] sm:$0xff] }
0x1adc   :  { %3997 = vmatpush3.bf16.msra.mxu0 %v3994_v23  ;;  %v4862_v23 = vld [vmem:[%s5212_s19 + $0x18] sm:$0xff] }
0x1add   :  { %3999 = vmatprep.subr.bf16.mxu0 %v3998_v2 }
0x1ae0   :  { %4001 = vmatpush3.bf16.msra.mxu0 %v3998_v2 }
0x1b92   :  { %v2633_v46 = vpop.f32.mrb[32].mxu1 }
0x1b93   :  { %v2644_v1 = vadd.f32 %v2633_v46, %v4456_v25  ;;  %v3823_v3 = vpop.f32.mrb[33].mxu1  ;;  %v4180_v25 = vmov 0  }
0x1b94   :  { %4017 = vset.pattern.permute.xlu1 %v4180_v25  ;;  %4018 = vset.pattern.permute.xlu0 %v4180_v25  ;;  %v2696_v24 = vsel %vm2680_vm4, 1, %v4180_v25  ;;  %v2698_v15 = vsel %vm2682_vm5, 1, %v4180_v25  ;;  %v2699_v22 = vsel %vm2683_vm6, 1, %v4180_v25  ;;  %v2701_v26 = vsel %vm2685_vm7, 1, %v4180_v25 }
0x1b95   :  { %2646 = vrot.lane.b32.xlu1 %v2644_v1, %s4177_s21  ;;  %v2697_v36 = vsel %vm2681_vm8, 1, %v4180_v25  ;;  %v2700_v38 = vsel %vm2684_vm9, 1, %v4180_v25  ;;  %v2702_v39 = vsel %vm2686_vm10, 1, %v4180_v25  ;;  %v2703_v40 = vsel %vm2687_vm11, 1, %v4180_v25 }
0x1b96   :  { %vm3054_vm6 = vcmp.ne.s32.totalorder %v4850_v30, 0  ;;  %vm3078_vm7 = vcmask 7168   ;;  %vm3056_vm8 = vcmp.ne.s32.totalorder %v4845_v27, 0  ;;  %vm3057_vm9 = vcmp.ne.s32.totalorder %v4862_v23, 0 }
0x1b97   :  { %vm3058_vm10 = vcmp.ne.s32.totalorder %v4857_v31, 0 }
0x1bae   :  { %v2561_v5 = vpop.f32.mrb[24].mxu0 }
0x1baf   :  { %v3812_v6 = vpop.f32.mrb[25].mxu0  ;;  %v2562_v8 = vadd.f32 %v4149_v7, %v2561_v5 }
0x1bb1   :  { %v2637_v9 = vadd.f32 %v2633_v46, %v2562_v8  ;;  %v2694_v46 = vld [vmem:[#allocation2 + $0x30] sm:$0xff] }
0x1bb3   :  { %v3367_v43 = vmul.f32 -1.442695, %v2637_v9  ;;  %v3368_v9 = vld [vmem:[%s5201_s16] ss:$0 sm:$0xff]  ;;  %s4182_s16 = smov [#allocation3]  }
0x1bb4   :  { %s3301_s0 = sshll.u32 %s4182_s16, 4  ;;  %s3302_s0 = int_to_ptr.vmem [resolvable:$true] %s3301_s0 }
0x1bb5   :  { %4109 = vpow2.f32 %v3367_v43  ;;  %s4150_s1 = scalar_lea.vmem %s3302_s0, 16  ;;  %s4154_s3 = scalar_lea.vmem %s3302_s0, 32 }
0x1bb6   :  { %p4151_p0 = scmp.ne.s32.totalorder %s3302_s0, %s4150_s1  ;;  %p4155_p1 = scmp.lt.s32.totalorder %s3302_s0, %s3302_s0 }
0x1bb7   :  { %p4156_p2 = scmp.lt.s32.totalorder %s4154_s3, %s4150_s1 }
0x1bb9   :  { %p4157_p3 = por %p4156_p2, %p4155_p1 }
0x1bbb   :  { %p4158_p4 = pnand %p4157_p3, %p4151_p0 }
0x1bbf   :  { %v4110_v10 = vpop.eup %4109 }
0x1bc0   :  { %v2641_v11 = vadd.f32 1.0, %v4110_v10 }
0x1bc2   :  { %4111 = vrcp.f32 %v2641_v11 }
0x1bcc   :  { %v4112_v12 = vpop.eup %4111 }
0x1c07   :  { %v2647_v35 = vpop.permute.xlu1 %2646 }
0x1c08   :  { %v2649_v13 = vmul.f32 %v4112_v12, %v2647_v35 }
0x1c0a   :  { %2651 = vrot.lane.b32.xlu0 %v2649_v13, %s4177_s21 }
0x1c7c   :  { %v2652_v16 = vpop.permute.xlu0 %2651 }
0x1c7d   :  { %v2654_v18 = vadd.f32 %v2652_v16, %v2562_v8 }
0x1c7f   :  { %4113 = vtanh.f32 %v2654_v18 }
0x1c89   :  { %v4114_v20 = vpop.eup %4113 }
0x1c8a   :  { %v2656_v54 = vsub.f32 %v2383_v61, %v4114_v20  ;;  %v2692_v61 = vld [vmem:[#allocation2 + $0x20] sm:$0xff] }
0x1c8c   :  { %2658 = vrot.lane.b32.xlu1 %v2656_v54, %s4179_s29 }
0x1c90   :  { %2705 = vperm.xlu1 %4017, %v2696_v24  }
0x1c94   :  { %2711 = vperm.xlu1 %4017, %v2698_v15  }
0x1c98   :  { %2714 = vperm.xlu1 %4017, %v2699_v22  }
0x1c9c   :  { %2720 = vperm.xlu1 %4017, %v2701_v26   ;;  %v4839_v26 = vld [vmem:[%s5212_s19 + $0x8] sm:$0xff] }
0x1cfe   :  { %v2659_v33 = vpop.permute.xlu1 %2658 }
0x1cff   :  { %v2661_v48 = vmul.f32 %v4112_v12, %v2659_v33 }
0x1d01   :  { %2663 = vrot.lane.b32.xlu0 %v2661_v48, %s4178_s5 }
0x1d05   :  { %2708 = vperm.xlu0 %4018, %v2697_v36  }
0x1d09   :  { %2717 = vperm.xlu0 %4018, %v2700_v38   ;;  %v4889_v38 = vld [vmem:[%s5212_s19 + $0x38] sm:$0xff] }
0x1d0d   :  { %2723 = vperm.xlu0 %4018, %v2702_v39  }
0x1d0f   :  { %v2706_v28 = vpop.permute.xlu1 %2705 }
0x1d10   :  { %vm2728_vm12 = vcmp.eq.s32.totalorder %v2706_v28, 1 }
0x1d11   :  { %v2736_v42 = vsel %vm2728_vm12, %v2688_v41, 0.0  ;;  %2726 = vperm.xlu0 %4018, %v2703_v40  }
0x1d12   :  { %3832 = vmatprep.mubr.msk.f32.mxu0 %vm377_vm3, %v2736_v42 }
0x1d13   :  { %v2712_v47 = vpop.permute.xlu1 %2711 }
0x1d14   :  { %vm2730_vm13 = vcmp.eq.s32.totalorder %v2712_v47, 1 }
0x1d15   :  { %v2738_v45 = vsel %vm2730_vm13, %v2690_v56, 0.0  ;;  %vm3059_vm13 = vcmp.ne.s32.totalorder %v4869_v32, 0 }
0x1d17   :  { %v2715_v49 = vpop.permute.xlu1 %2714 }
0x1d18   :  { %vm2731_vm15 = vcmp.eq.s32.totalorder %v2715_v49, 1 }
0x1d19   :  { %v2739_v62 = vsel %vm2731_vm15, %v2691_v60, 0.0 }
0x1d1b   :  { %v2721_v58 = vpop.permute.xlu1 %2720 }
0x1d1c   :  { %vm2733_vm1 = vcmp.eq.s32.totalorder %v2721_v58, 1 }
0x1d1d   :  { %v2741_v1 = vsel %vm2733_vm1, %v2693_v0, 0.0 }
0x1d73   :  { %v2664_v44 = vpop.permute.xlu0 %2663 }
0x1d74   :  { %v2666_v50 = vadd.f32 %v4114_v20, %v2664_v44 }
0x1d76   :  { %2668 = vrot.lane.b32.xlu1 %v2666_v50, %s4177_s21  ;;  %s4181_s21 = smov 1.0  }
0x1d84   :  { %v2709_v51 = vpop.permute.xlu0 %2708 }
0x1d85   :  { %vm2729_vm14 = vcmp.eq.s32.totalorder %v2709_v51, 1 }
0x1d86   :  { %v2737_v57 = vsel %vm2729_vm14, %v2689_v53, 0.0 }
0x1d87   :  { %3833 = vmatmul.mubr.msk.f32.vlgmr.msra.gmra.mrb[26].mxu0 %vm377_vm3, %v2737_v57 }
0x1d88   :  { %v2718_v59 = vpop.permute.xlu0 %2717  ;;  %3835 = vmatprep.mubr.msk.f32.mxu0 %vm377_vm3, %v2738_v45 }
0x1d89   :  { %vm2732_vm0 = vcmp.eq.s32.totalorder %v2718_v59, 1 }
0x1d8a   :  { %v2740_v52 = vsel %vm2732_vm0, %v2692_v61, 0.0  ;;  %vm3060_vm0 = vcmp.ne.s32.totalorder %v4883_v37, 0 }
0x1d8b   :  { %3836 = vmatmul.mubr.msk.f32.gmra.mrb[28].mxu0 %vm377_vm3, %v2739_v62 }
0x1d8c   :  { %v2724_v63 = vpop.permute.xlu0 %2723  ;;  %3838 = vmatprep.mubr.msk.f32.mxu0 %vm377_vm3, %v2740_v52 }
0x1d8d   :  { %vm2734_vm4 = vcmp.eq.s32.totalorder %v2724_v63, 1 }
0x1d8e   :  { %v2742_v3 = vsel %vm2734_vm4, %v2694_v46, 0.0 }
0x1d8f   :  { %3839 = vmatmul.mubr.msk.f32.gmra.mrb[30].mxu0 %vm377_vm3, %v2741_v1 }
0x1d90   :  { %3841 = vmatprep.mubr.msk.f32.mxu0 %vm377_vm3, %v2742_v3  ;;  %v2727_v6 = vpop.permute.xlu0 %2726 }
0x1d91   :  { %vm2735_vm5 = vcmp.eq.s32.totalorder %v2727_v6, 1 }
0x1de8   :  { %v2669_v5 = vpop.permute.xlu1 %2668 }
0x1de9   :  { %2671 = vst.msk [vmem:[#allocation2 + $0x38] sm:$0xff] %vm377_vm3, %v2669_v5 }
0x1df0   :  { %v2695_v7 = vld [vmem:[#allocation2 + $0x38] sm:$0xff] }
0x1df1   :  { %v2743_v8 = vsel %vm2735_vm5, %v2695_v7, 0.0  ;;  %vm3061_vm5 = vcmp.ne.s32.totalorder %v4889_v38, 0 }
0x1df2   :  { %3842 = vmatmul.mubr.msk.f32.gmra.mrb[32].mxu0 %vm377_vm3, %v2743_v8  ;;  %vm3055_vm3 = vcmp.ne.s32.totalorder %v4839_v26, 0 }
0x1e5a   :  { %v3834_v43 = vpop.f32.mrb[26].mxu0 }
0x1e5b   :  { %v4812_v10 = vadd.f32 %v3834_v43, %v3368_v9  ;;  %v2845_v11 = vpop.f32.mrb[27].mxu0 }
0x1e5c   :  { %v4814_v12 = vadd.f32 %v3368_v9, %v2845_v11 }
0x1e5d   :  { %v2887_v35 = vsel %vm69_vm2, %v4812_v10, -inf }
0x1e5e   :  { %2888 = vmax.xlane.f32.xlu0 %v2887_v35  ;;  %v3837_v13 = vpop.f32.mrb[28].mxu0  ;;  %v2884_v25 = vsel %vm69_vm2, %v4814_v12, -inf }
0x1e5f   :  { %v4820_v16 = vadd.f32 %v3837_v13, %v3368_v9  ;;  %v2855_v18 = vpop.f32.mrb[29].mxu0  ;;  %2885 = vmax.xlane.f32.xlu1 %v2884_v25 }
0x1e60   :  { %v4822_v19 = vadd.f32 %v3368_v9, %v2855_v18 }
0x1e61   :  { %v2893_v20 = vsel %vm69_vm2, %v4820_v16, -inf }
0x1e62   :  { %v3840_v54 = vpop.f32.mrb[30].mxu0  ;;  %v2890_v21 = vsel %vm69_vm2, %v4822_v19, -inf }
0x1e63   :  { %v4828_v24 = vadd.f32 %v3840_v54, %v3368_v9  ;;  %v2865_v14 = vpop.f32.mrb[31].mxu0  ;;  %2891 = vmax.xlane.f32.xlu0 %v2890_v21  ;;  %2894 = vmax.xlane.f32.xlu1 %v2893_v20 }
0x1e64   :  { %v4830_v15 = vadd.f32 %v3368_v9, %v2865_v14  ;;  %v3378_v14 = vsel %vm3055_vm3, 1.0, %v4176_v4 }
0x1e65   :  { %v2899_v17 = vsel %vm69_vm2, %v4828_v24, -inf }
0x1e66   :  { %v2896_v22 = vsel %vm69_vm2, %v4830_v15, -inf }
0x1e67   :  { %2897 = vmax.xlane.f32.xlu0 %v2896_v22  ;;  %2900 = vmax.xlane.f32.xlu1 %v2899_v17  ;;  %v3377_v17 = vsel %vm3054_vm6, 1.0, %v4176_v4 }
0x1e78   :  { %2986 = vperm.xlu1 %4017, %v4839_v26  }
0x1e7c   :  { %2989 = vperm.xlu1 %4017, %v4845_v27  }
0x1e7d   :  { %2983 = vperm.xlu0 %4018, %v4850_v30  }
0x1e80   :  { %2995 = vperm.xlu1 %4017, %v4857_v31  }
0x1e81   :  { %2992 = vperm.xlu0 %4018, %v4862_v23  }
0x1e85   :  { %2998 = vperm.xlu0 %4018, %v4869_v32  }
0x1ec5   :  { %v3843_v2 = vpop.f32.mrb[32].mxu0 }
0x1ec6   :  { %v4872_v29 = vadd.f32 %v3843_v2, %v3368_v9  ;;  %v2875_v33 = vpop.f32.mrb[33].mxu0 }
0x1ec7   :  { %v4874_v48 = vadd.f32 %v3368_v9, %v2875_v33  ;;  %v3120_v33 = vsel %vm3078_vm7, %v3378_v14, 0.0 }
0x1ec8   :  { %v2905_v34 = vsel %vm69_vm2, %v4872_v29, -inf }
0x1ec9   :  { %2906 = vmax.xlane.f32.xlu1 %v2905_v34  ;;  %v2902_v36 = vsel %vm69_vm2, %v4874_v48, -inf  ;;  %v3119_v34 = vsel %vm3078_vm7, %v3377_v17, 0.0 }
0x1eca   :  { %2903 = vmax.xlane.f32.xlu0 %v2902_v36  ;;  %v3379_v36 = vsel %vm3056_vm8, 1.0, %v4176_v4 }
0x1eda   :  { %3001 = vperm.xlu1 %4017, %v4883_v37  }
0x1ee0   :  { %3004 = vperm.xlu0 %4018, %v4889_v38  }
0x1eeb   :  { %v4892_v55 = vpop.xlane.xlu0 %2888 }
0x1eec   :  { %v4896_v39 = vsub.f32 %v4812_v10, %v4892_v55  ;;  %v4898_v40 = vpop.xlane.xlu1 %2885 }
0x1eed   :  { %v4902_v28 = vsub.f32 %v4814_v12, %v4898_v40 }
0x1eee   :  { %v2918_v41 = vmul.f32 1.442695, %v4896_v39 }
0x1eef   :  { %v2916_v42 = vmul.f32 1.442695, %v4902_v28 }
0x1ef0   :  { %4115 = vpow2.f32 %v2918_v41  ;;  %v4906_v44 = vpop.xlane.xlu0 %2891  ;;  %v4908_v50 = vpop.xlane.xlu1 %2894  ;;  %v2972_v41 = vlaneseq }
0x1ef1   :  { %4117 = vpow2.f32 %v2916_v42  ;;  %v4912_v47 = vsub.f32 %v4822_v19, %v4906_v44  ;;  %v4916_v49 = vsub.f32 %v4820_v16, %v4908_v50  ;;  %v3121_v42 = vadd.f32 %v3120_v33, %v3119_v34 }
0x1ef3   :  { %v2920_v51 = vmul.f32 1.442695, %v4912_v47  ;;  %v2922_v53 = vmul.f32 1.442695, %v4916_v49 }
0x1ef4   :  { %v4920_v56 = vpop.xlane.xlu0 %2897  ;;  %v4922_v57 = vpop.xlane.xlu1 %2900 }
0x1ef5   :  { %4119 = vpow2.f32 %v2920_v51  ;;  %v4926_v45 = vsub.f32 %v4830_v15, %v4920_v56  ;;  %v4930_v58 = vsub.f32 %v4828_v24, %v4922_v57  ;;  %v3122_v51 = vsel %vm3078_vm7, %v3379_v36, 0.0 }
0x1ef6   :  { %4121 = vpow2.f32 %v2922_v53  ;;  %v3380_v53 = vsel %vm3057_vm9, 1.0, %v4176_v4 }
0x1ef7   :  { %v2924_v59 = vmul.f32 1.442695, %v4926_v45  ;;  %v2926_v60 = vmul.f32 1.442695, %v4930_v58 }
0x1ef8   :  { %v2987_v9 = vpop.permute.xlu1 %2986 }
0x1ef9   :  { %4123 = vpow2.f32 %v2924_v59  ;;  %v4976_v59 = vand.u32 127, %v2972_v41 }
0x1efa   :  { %v4116_v61 = vpop.eup %4115  ;;  %4125 = vpow2.f32 %v2926_v60  ;;  %v3123_v60 = vadd.f32 %v3122_v51, %v3121_v42 }
0x1efb   :  { %v4118_v62 = vpop.eup %4117  ;;  %v2935_v63 = vsel %vm69_vm2, %v4116_v61, 0.0  ;;  %v3124_v61 = vsel %vm3078_vm7, %v3380_v53, 0.0  ;;  %vm3007_vm11 = vcmp.eq.s32.totalorder %v4976_v59, %v2987_v9 }
0x1efc   :  { %v2932_v52 = vsel %vm69_vm2, %v4118_v62, 0.0  ;;  %v2984_v43 = vpop.permute.xlu0 %2983  ;;  %v2990_v11 = vpop.permute.xlu1 %2989 }
0x1efd   :  { %vm3006_vm12 = vcmp.eq.s32.totalorder %v4976_v59, %v2984_v43  ;;  %vm3008_vm15 = vcmp.eq.s32.totalorder %v4976_v59, %v2990_v11  ;;  %v3383_v11 = vsel %vm3060_vm0, 1.0, %v4176_v4 }
0x1efe   :  { %2933 = vadd.xlane.f32.xlu1 %v2932_v52  ;;  %v3381_v52 = vsel %vm3058_vm10, 1.0, %v4176_v4 }
0x1eff   :  { %v4120_v0 = vpop.eup %4119  ;;  %2936 = vadd.xlane.f32.xlu0 %v2935_v63 }
0x1f00   :  { %v4122_v46 = vpop.eup %4121  ;;  %v2938_v3 = vsel %vm69_vm2, %v4120_v0, 0.0  ;;  %v2993_v35 = vpop.permute.xlu0 %2992 }
0x1f01   :  { %v2941_v1 = vsel %vm69_vm2, %v4122_v46, 0.0  ;;  %v4940_v13 = vpop.permute.xlu1 %2995  ;;  %v3125_v46 = vadd.f32 %v3124_v61, %v3123_v60  ;;  %vm3009_vm14 = vcmp.eq.s32.totalorder %v4976_v59, %v2993_v35  ;;  %v3016_v35 = vsel %vm3008_vm15, %v4912_v47, 0.0 }
0x1f02   :  { %2942 = vadd.xlane.f32.xlu1 %v2941_v1  ;;  %v3015_v1 = vsel %vm3007_vm11, %v4896_v39, 0.0  ;;  %v3017_v9 = vsel %vm3009_vm14, %v4916_v49, 0.0  ;;  %vm3010_vm4 = vcmp.eq.s32.totalorder %v4976_v59, %v4940_v13  ;;  %v3028_v47 = vsel %vm69_vm2, %v3016_v35, 0.0 }
0x1f03   :  { %v4124_v5 = vpop.eup %4123  ;;  %2939 = vadd.xlane.f32.xlu0 %v2938_v3  ;;  %v3025_v39 = vsel %vm69_vm2, %v3015_v1, 0.0  ;;  %v3031_v17 = vsel %vm69_vm2, %v3017_v9, 0.0  ;;  %vm3152_vm11 = vcmp.eq.f32.partialorder %v4812_v10, %v4892_v55  ;;  %v3018_v33 = vsel %vm3010_vm4, %v4926_v45, 0.0 }
0x1f04   :  { %v4126_v6 = vpop.eup %4125  ;;  %v2944_v8 = vsel %vm69_vm2, %v4124_v5, 0.0  ;;  %v2999_v25 = vpop.permute.xlu0 %2998  ;;  %v3126_v5 = vsel %vm3078_vm7, %v3381_v52, 0.0  ;;  %v3384_v13 = vsel %vm3061_vm5, 1.0, %v4176_v4  ;;  %v3160_v34 = vsel %vm3152_vm11, %v4976_v59, 16 }
0x1f05   :  { %v2947_v7 = vsel %vm69_vm2, %v4126_v6, 0.0  ;;  %v3014_v6 = vsel %vm3006_vm12, %v4902_v28, 0.0  ;;  %vm3011_vm1 = vcmp.eq.s32.totalorder %v4976_v59, %v2999_v25  ;;  %v3130_v25 = vsel %vm3078_vm7, %v3383_v11, 0.0 }
0x1f06   :  { %2948 = vadd.xlane.f32.xlu1 %v2947_v7  ;;  %v3382_v7 = vsel %vm3059_vm13, 1.0, %v4176_v4  ;;  %v3022_v43 = vsel %vm69_vm2, %v3014_v6, 0.0  ;;  %v3034_v10 = vsel %vm69_vm2, %v3018_v33, 0.0  ;;  %vm3154_vm15 = vcmp.eq.f32.partialorder %v4820_v16, %v4908_v50 }
0x1f07   :  { %2945 = vadd.xlane.f32.xlu0 %v2944_v8  ;;  %v3127_v8 = vadd.f32 %v3126_v5, %v3125_v46  ;;  %v3128_v28 = vsel %vm3078_vm7, %v3382_v7, 0.0  ;;  %v3132_v4 = vsel %vm3078_vm7, %v3384_v13, 0.0  ;;  %v5029_v41 = vsel %vm69_vm2, %v3160_v34, 2147483647 }
0x1f08   :  { %v3162_v51 = vsel %vm3154_vm15, %v4976_v59, 16  ;;  %v3184_v16 = vshra.s32 %v5029_v41, 16  ;;  %vm3149_vm15 = vcmask 0  }
0x1f09   :  { %v5038_v50 = vsel %vm69_vm2, %v3162_v51, 2147483647 }
0x1f0a   :  { %v5043_v60 = vcvt.s32.f32 %v3184_v16  ;;  %v3214_v61 = vshra.s32 %v5038_v50, 16 }
0x1f56   :  { %v4944_v18 = vpop.xlane.xlu1 %2906 }
0x1f57   :  { %v4948_v20 = vsub.f32 %v4872_v29, %v4944_v18  ;;  %v4950_v54 = vpop.xlane.xlu0 %2903  ;;  %vm3158_vm4 = vcmp.eq.f32.partialorder %v4872_v29, %v4944_v18 }
0x1f58   :  { %v4954_v21 = vsub.f32 %v4874_v48, %v4950_v54 }
0x1f59   :  { %v2930_v22 = vmul.f32 1.442695, %v4948_v20 }
0x1f5a   :  { %v2928_v2 = vmul.f32 1.442695, %v4954_v21  ;;  %v3002_v49 = vpop.permute.xlu1 %3001 }
0x1f5b   :  { %4127 = vpow2.f32 %v2930_v22  ;;  %v3129_v22 = vadd.f32 %v3128_v28, %v3127_v8  ;;  %vm3012_vm14 = vcmp.eq.s32.totalorder %v4976_v59, %v3002_v49 }
0x1f5c   :  { %4129 = vpow2.f32 %v2928_v2  ;;  %v3019_v2 = vsel %vm3011_vm1, %v4930_v58, 0.0  ;;  %v3020_v45 = vsel %vm3012_vm14, %v4954_v21, 0.0  ;;  %vm3156_vm1 = vcmp.eq.f32.partialorder %v4828_v24, %v4922_v57 }
0x1f5d   :  { %v3037_v58 = vsel %vm69_vm2, %v3019_v2, 0.0  ;;  %v3131_v55 = vadd.f32 %v3130_v25, %v3129_v22  ;;  %v3164_v21 = vsel %vm3156_vm1, %v4976_v59, 16  ;;  %v3166_v24 = vsel %vm3158_vm4, %v4976_v59, 16 }
0x1f5e   :  { %v5051_v57 = vcvt.s32.f32 %v3214_v61 }
0x1f5f   :  { %v3005_v14 = vpop.permute.xlu0 %3004  ;;  %v3133_v53 = vadd.f32 %v3132_v4, %v3131_v55 }
0x1f60   :  { %vm3013_vm12 = vcmp.eq.s32.totalorder %v4976_v59, %v3005_v14 }
0x1f61   :  { %v3021_v36 = vsel %vm3013_vm12, %v4948_v20, 0.0  ;;  %v3040_v20 = vsel %vm69_vm2, %v3020_v45, 0.0 }
0x1f62   :  { %v3043_v42 = vsel %vm69_vm2, %v3021_v36, 0.0 }
0x1f65   :  { %v4128_v62 = vpop.eup %4127 }
0x1f66   :  { %v4130_v63 = vpop.eup %4129  ;;  %v2953_v0 = vsel %vm69_vm2, %v4128_v62, 0.0  ;;  %v5047_v62 = vsel %vm69_vm2, %v3164_v21, 2147483647 }
0x1f67   :  { %2954 = vadd.xlane.f32.xlu1 %v2953_v0  ;;  %v2950_v3 = vsel %vm69_vm2, %v4130_v63, 0.0  ;;  %v3244_v52 = vshra.s32 %v5047_v62, 16  ;;  %v5055_v63 = vsel %vm69_vm2, %v3166_v24, 2147483647 }
0x1f68   :  { %2951 = vadd.xlane.f32.xlu0 %v2950_v3  ;;  %v3274_v18 = vshra.s32 %v5055_v63, 16 }
0x1f69   :  { %v5058_v29 = vcvt.s32.f32 %v3244_v52 }
0x1f6a   :  { %v5062_v0 = vcvt.s32.f32 %v3274_v18 }
0x1f6b   :  { %3026 = vadd.xlane.f32.xlu1 %v3025_v39 }
0x1f6c   :  { %3023 = vadd.xlane.f32.xlu0 %v3022_v43 }
0x1f6f   :  { %3032 = vadd.xlane.f32.xlu1 %v3031_v17 }
0x1f70   :  { %3029 = vadd.xlane.f32.xlu0 %v3028_v47 }
0x1f73   :  { %3038 = vadd.xlane.f32.xlu1 %v3037_v58 }
0x1f74   :  { %3035 = vadd.xlane.f32.xlu0 %v3034_v10 }
0x1f77   :  { %3044 = vadd.xlane.f32.xlu1 %v3043_v42 }
0x1f78   :  { %3041 = vadd.xlane.f32.xlu0 %v3040_v20 }
0x1f7b   :  { %3134 = vadd.xlane.f32.xlu1 %v3133_v53 }
0x1f7f   :  { %3187 = vmin.xlane.f32.xlu1 %v5043_v60 }
0x1f83   :  { %3217 = vmin.xlane.f32.xlu1 %v5051_v57 }
0x1f87   :  { %3247 = vmin.xlane.f32.xlu1 %v5058_v29 }
0x1f8b   :  { %3277 = vmin.xlane.f32.xlu1 %v5062_v0  ;;  %v2934_v46 = vpop.xlane.xlu1 %2933 }
0x1f8c   :  { %v2937_v1 = vpop.xlane.xlu0 %2936 }
0x1f8d   :  { %4131 = vlog2.f32 %v2937_v1 }
0x1f8e   :  { %4133 = vlog2.f32 %v2934_v46 }
0x1f8f   :  { %v2943_v3 = vpop.xlane.xlu1 %2942 }
0x1f90   :  { %v2940_v5 = vpop.xlane.xlu0 %2939  ;;  %4135 = vlog2.f32 %v2943_v3 }
0x1f91   :  { %4137 = vlog2.f32 %v2940_v5 }
0x1f93   :  { %v2949_v6 = vpop.xlane.xlu1 %2948 }
0x1f94   :  { %v2946_v7 = vpop.xlane.xlu0 %2945  ;;  %4139 = vlog2.f32 %v2949_v6 }
0x1f95   :  { %4141 = vlog2.f32 %v2946_v7 }
0x1f97   :  { %v4132_v39 = vpop.eup %4131 }
0x1f98   :  { %v4134_v9 = vpop.eup %4133  ;;  %v2959_v28 = vmul.f32 0.6931472, %v4132_v39 }
0x1f99   :  { %v2957_v14 = vmul.f32 0.6931472, %v4134_v9 }
0x1f9a   :  { %v4136_v35 = vpop.eup %4135 }
0x1f9b   :  { %v4138_v49 = vpop.eup %4137  ;;  %v2963_v25 = vmul.f32 0.6931472, %v4136_v35 }
0x1f9c   :  { %v2961_v34 = vmul.f32 0.6931472, %v4138_v49 }
0x1f9e   :  { %v4140_v33 = vpop.eup %4139 }
0x1f9f   :  { %v4142_v36 = vpop.eup %4141  ;;  %v2967_v16 = vmul.f32 0.6931472, %v4140_v33 }
0x1fa0   :  { %v2965_v52 = vmul.f32 0.6931472, %v4142_v36 }
0x1ff4   :  { %v2955_v8 = vpop.xlane.xlu1 %2954 }
0x1ff5   :  { %v2952_v43 = vpop.xlane.xlu0 %2951  ;;  %4143 = vlog2.f32 %v2955_v8 }
0x1ff6   :  { %4145 = vlog2.f32 %v2952_v43 }
0x1ff8   :  { %v3027_v11 = vpop.xlane.xlu1 %3026 }
0x1ff9   :  { %v3047_v17 = vsub.f32 %v3027_v11, %v2959_v28  ;;  %v3024_v22 = vpop.xlane.xlu0 %3023 }
0x1ffa   :  { %v3046_v2 = vsub.f32 %v3024_v22, %v2957_v14 }
0x1ffb   :  { %v3063_v47 = vsub.f32 0.0, %v3047_v17 }
0x1ffc   :  { %v3062_v13 = vsub.f32 0.0, %v3046_v2  ;;  %v3033_v58 = vpop.xlane.xlu1 %3032 }
0x1ffd   :  { %v3071_v10 = vsel %vm3055_vm3, %v3063_v47, 0.0  ;;  %v3049_v55 = vsub.f32 %v3033_v58, %v2963_v25  ;;  %v3030_v45 = vpop.xlane.xlu0 %3029  ;;  %vm3151_vm3 = vcmp.eq.f32.partialorder %v4814_v12, %v4898_v40  ;;  %v3183_v40 = vand.u32 65535, %v5029_v41 }
0x1ffe   :  { %v3070_v4 = vsel %vm3054_vm6, %v3062_v13, 0.0  ;;  %v3048_v42 = vsub.f32 %v3030_v45, %v2961_v34  ;;  %v3080_v51 = vsel %vm3078_vm7, %v3071_v10, 0.0  ;;  %v3159_v47 = vsel %vm3151_vm3, %v4976_v59, 16 }
0x1fff   :  { %v3079_v20 = vsel %vm3078_vm7, %v3070_v4, 0.0  ;;  %v3065_v53 = vsub.f32 0.0, %v3049_v55  ;;  %v4144_v21 = vpop.eup %4143  ;;  %vm3153_vm6 = vcmp.eq.f32.partialorder %v4822_v19, %v4906_v44  ;;  %v5094_v34 = vsel %vm69_vm2, %v3159_v47, 2147483647 }
0x2000   :  { %v3064_v61 = vsub.f32 0.0, %v3048_v42  ;;  %v3039_v24 = vpop.xlane.xlu1 %3038  ;;  %v4146_v18 = vpop.eup %4145  ;;  %v3081_v1 = vadd.f32 %v3080_v51, %v3079_v20  ;;  %v2971_v39 = vmul.f32 0.6931472, %v4144_v21  ;;  %v3161_v10 = vsel %vm3153_vm6, %v4976_v59, 16 }
0x2001   :  { %v3051_v46 = vsub.f32 %v3039_v24, %v2967_v16  ;;  %v3036_v26 = vpop.xlane.xlu0 %3035  ;;  %v3073_v3 = vsel %vm3057_vm9, %v3065_v53, 0.0  ;;  %v2969_v28 = vmul.f32 0.6931472, %v4146_v18  ;;  %v3185_v45 = vcvt.s32.f32 %v3183_v40 }
0x2002   :  { %v3072_v30 = vsel %vm3056_vm8, %v3064_v61, 0.0  ;;  %v3050_v5 = vsub.f32 %v3036_v26, %v2965_v52  ;;  %v3084_v35 = vsel %vm3078_vm7, %v3073_v3, 0.0  ;;  %v3213_v19 = vand.u32 65535, %v5038_v50 }
0x2003   :  { %v3082_v6 = vsel %vm3078_vm7, %v3072_v30, 0.0  ;;  %v3067_v7 = vsub.f32 0.0, %v3051_v46  ;;  %vm3155_vm8 = vcmp.eq.f32.partialorder %v4830_v15, %v4920_v56  ;;  %v3169_v4 = vshra.s32 %v5094_v34, 16 }
0x2004   :  { %v3083_v8 = vadd.f32 %v3082_v6, %v3081_v1  ;;  %v3066_v9 = vsub.f32 0.0, %v3050_v5  ;;  %v3045_v43 = vpop.xlane.xlu1 %3044  ;;  %v5105_v42 = vsel %vm69_vm2, %v3161_v10, 2147483647  ;;  %v3163_v51 = vsel %vm3155_vm8, %v4976_v59, 16 }
0x2005   :  { %v3053_v11 = vsub.f32 %v3045_v43, %v2971_v39  ;;  %v3042_v23 = vpop.xlane.xlu0 %3041  ;;  %v3075_v27 = vsel %vm3059_vm13, %v3067_v7, 0.0  ;;  %v3215_v50 = vcvt.s32.f32 %v3213_v19  ;;  %v3243_v53 = vand.u32 65535, %v5047_v62 }
0x2006   :  { %v3074_v14 = vsel %vm3058_vm10, %v3066_v9, 0.0  ;;  %v3085_v49 = vadd.f32 %v3084_v35, %v3083_v8  ;;  %v3052_v17 = vsub.f32 %v3042_v23, %v2969_v28  ;;  %v3088_v32 = vsel %vm3078_vm7, %v3075_v27, 0.0 }
0x2007   :  { %v3086_v22 = vsel %vm3078_vm7, %v3074_v14, 0.0  ;;  %v3069_v2 = vsub.f32 0.0, %v3053_v11  ;;  %vm3157_vm10 = vcmp.eq.f32.partialorder %v4874_v48, %v4950_v54  ;;  %v3171_v56 = vcvt.s32.f32 %v3169_v4 }
0x2008   :  { %v3087_v25 = vadd.f32 %v3086_v22, %v3085_v49  ;;  %v3068_v33 = vsub.f32 0.0, %v3052_v17  ;;  %v3135_v12 = vpop.xlane.xlu1 %3134  ;;  %v5114_v16 = vsel %vm69_vm2, %v3163_v51, 2147483647  ;;  %v3165_v21 = vsel %vm3157_vm10, %v4976_v59, 16 }
0x2009   :  { %v3077_v31 = vsel %vm3061_vm5, %v3069_v2, 0.0  ;;  %v3245_v24 = vcvt.s32.f32 %v3243_v53  ;;  %v3273_v62 = vand.u32 65535, %v5055_v63  ;;  %v5121_v52 = vsel %vm69_vm2, %v3165_v21, 2147483647 }
0x200a   :  { %v3076_v13 = vsel %vm3060_vm0, %v3068_v33, 0.0  ;;  %v3089_v58 = vadd.f32 %v3088_v32, %v3087_v25  ;;  %v3092_v38 = vsel %vm3078_vm7, %v3077_v31, 0.0  ;;  %v3259_v1 = vshra.s32 %v5121_v52, 16 }
0x200b   :  { %v3090_v36 = vsel %vm3078_vm7, %v3076_v13, 0.0  ;;  %v3275_v46 = vcvt.s32.f32 %v3273_v62  ;;  %v3168_v6 = vand.u32 65535, %v5094_v34  ;;  %v3198_v27 = vand.u32 65535, %v5105_v42 }
0x200c   :  { %v3091_v41 = vadd.f32 %v3090_v36, %v3089_v58  ;;  %v3188_v55 = vpop.xlane.xlu1 %3187  ;;  %v5125_v63 = vcvt.s32.f32 %v3259_v1  ;;  %v3228_v31 = vand.u32 65535, %v5114_v16 }
0x200d   :  { %vm3189_vm9 = vcmp.eq.f32.partialorder %v5043_v60, %v3188_v55  ;;  %v3199_v60 = vshra.s32 %v5105_v42, 16  ;;  %v3194_v30 = vcvt.f32.s32 %v3188_v55  ;;  %v3170_v23 = vcvt.s32.f32 %v3168_v6 }
0x200e   :  { %v3190_v37 = vsel %vm3189_vm9, %v3185_v45, inf  ;;  %v3093_v44 = vadd.f32 %v3092_v38, %v3091_v41  ;;  %v3200_v40 = vcvt.s32.f32 %v3198_v27 }
0x200f   :  { %3191 = vmin.xlane.f32.xlu1 %v3190_v37  ;;  %v3201_v54 = vcvt.s32.f32 %v3199_v60  ;;  %v3195_v39 = vshll.u32 %v3194_v30, 16  ;;  %v3230_v37 = vcvt.s32.f32 %v3228_v31 }
0x2010   :  { %3094 = vadd.xlane.f32.xlu0 %v3093_v44  ;;  %v3218_v20 = vpop.xlane.xlu1 %3217 }
0x2011   :  { %vm3219_vm13 = vcmp.eq.f32.partialorder %v5051_v57, %v3218_v20  ;;  %v3229_v57 = vshra.s32 %v5114_v16, 16  ;;  %v3224_v8 = vcvt.f32.s32 %v3218_v20  ;;  %v3258_v20 = vand.u32 65535, %v5121_v52 }
0x2012   :  { %v3220_v15 = vsel %vm3219_vm13, %v3215_v50, inf }
0x2013   :  { %3221 = vmin.xlane.f32.xlu1 %v3220_v15  ;;  %v3231_v26 = vcvt.s32.f32 %v3229_v57  ;;  %v3225_v14 = vshll.u32 %v3224_v8, 16 }
0x2014   :  { %3172 = vmin.xlane.f32.xlu0 %v3171_v56  ;;  %v3248_v61 = vpop.xlane.xlu1 %3247 }
0x2015   :  { %vm3249_vm0 = vcmp.eq.f32.partialorder %v5058_v29, %v3248_v61  ;;  %v3136_v29 = vrot.slane %v3135_v12, 4  ;;  %v3254_v49 = vcvt.f32.s32 %v3248_v61 }
0x2016   :  { %v3250_v48 = vsel %vm3249_vm0, %v3245_v24, inf }
0x2017   :  { %3251 = vmin.xlane.f32.xlu1 %v3250_v48  ;;  %v3137_v3 = vadd.f32 %v3136_v29, %v3135_v12  ;;  %v3255_v13 = vshll.u32 %v3254_v49, 16 }
0x2018   :  { %3202 = vmin.xlane.f32.xlu0 %v3201_v54  ;;  %v3278_v18 = vpop.xlane.xlu1 %3277 }
0x2019   :  { %vm3279_vm5 = vcmp.eq.f32.partialorder %v5062_v0, %v3278_v18  ;;  %v3138_v7 = vrot.slane %v3137_v3, 2  ;;  %v3284_v58 = vcvt.f32.s32 %v3278_v18 }
0x201a   :  { %v3280_v59 = vsel %vm3279_vm5, %v3275_v46, inf }
0x201b   :  { %3281 = vmin.xlane.f32.xlu1 %v3280_v59  ;;  %v3139_v2 = vadd.f32 %v3138_v7, %v3137_v3  ;;  %v3285_v44 = vshll.u32 %v3284_v58, 16 }
0x201c   :  { %3232 = vmin.xlane.f32.xlu0 %v3231_v26 }
0x201d   :  { %v3140_v10 = vrot.slane %v3139_v2, 1 }
0x201f   :  { %v3141_v51 = vadd.f32 %v3140_v10, %v3139_v2 }
0x2020   :  { %3262 = vmin.xlane.f32.xlu0 %v5125_v63 }
0x209c   :  { %v3192_v5 = vpop.xlane.xlu1 %3191 }
0x209d   :  { %v3193_v0 = vcvt.f32.s32 %v3192_v5  ;;  %v3095_v9 = vpop.xlane.xlu0 %3094 }
0x209e   :  { %v3096_v43 = vrot.slane %v3095_v9, 4 }
0x209f   :  { %v3196_v28 = vadd.s32 %v3195_v39, %v3193_v0 }
0x20a0   :  { %v3097_v35 = vadd.f32 %v3096_v43, %v3095_v9  ;;  %v3222_v11 = vpop.xlane.xlu1 %3221 }
0x20a1   :  { %3288 = vst.msk [vmem:[%s5203_s18 + $0x8] sm:$0xff] %vm3078_vm7, %v3196_v28  ;;  %v3223_v17 = vcvt.f32.s32 %v3222_v11  ;;  %v5134_v22 = vpop.xlane.xlu0 %3172 }
0x20a2   :  { %v3098_v47 = vrot.slane %v3097_v35, 2  ;;  %vm3174_vm2 = vcmp.eq.f32.partialorder %v3171_v56, %v5134_v22  ;;  %v3260_v56 = vcvt.s32.f32 %v3258_v20 }
0x20a3   :  { %v3226_v25 = vadd.s32 %v3225_v14, %v3223_v17  ;;  %v3175_v33 = vsel %vm3174_vm2, %v3170_v23, inf }
0x20a4   :  { %3176 = vmin.xlane.f32.xlu0 %v3175_v33  ;;  %v3252_v12 = vpop.xlane.xlu1 %3251  ;;  %v3099_v32 = vadd.f32 %v3098_v47, %v3097_v35 }
0x20a5   :  { %3290 = vst.msk [vmem:[%s5203_s18 + $0x18] sm:$0xff] %vm3078_vm7, %v3226_v25  ;;  %v3253_v34 = vcvt.f32.s32 %v3252_v12  ;;  %v5142_v36 = vpop.xlane.xlu0 %3202 }
0x20a6   :  { %vm3204_vm11 = vcmp.eq.f32.partialorder %v3201_v54, %v5142_v36  ;;  %v3100_v41 = vrot.slane %v3099_v32, 1 }
0x20a7   :  { %v3256_v55 = vadd.s32 %v3255_v13, %v3253_v34  ;;  %v3205_v45 = vsel %vm3204_vm11, %v3200_v40, inf }
0x20a8   :  { %3206 = vmin.xlane.f32.xlu0 %v3205_v45  ;;  %v3282_v19 = vpop.xlane.xlu1 %3281  ;;  %v3101_v38 = vadd.f32 %v3100_v41, %v3099_v32 }
0x20a9   :  { %3292 = vst.msk [vmem:[%s5203_s18 + $0x28] sm:$0xff] %vm3078_vm7, %v3256_v55  ;;  %v3283_v4 = vcvt.f32.s32 %v3282_v19  ;;  %v3233_v42 = vpop.xlane.xlu0 %3232 }
0x20aa   :  { %vm3234_vm12 = vcmp.eq.f32.partialorder %v3231_v26, %v3233_v42  ;;  %4002 = vpush %v3101_v38 }
0x20ab   :  { %v3286_v50 = vadd.s32 %v3285_v44, %v3283_v4  ;;  %4004 = vpush %v3141_v51  ;;  %v3235_v53 = vsel %vm3234_vm12, %v3230_v37, inf }
0x20ac   :  { %3236 = vmin.xlane.f32.xlu0 %v3235_v53 }
0x20ad   :  { %3294 = vst.msk [vmem:[%s5203_s18 + $0x38] sm:$0xff] %vm3078_vm7, %v3286_v50  ;;  %v3263_v15 = vpop.xlane.xlu0 %3262 }
0x20ae   :  { %vm3264_vm14 = vcmp.eq.f32.partialorder %v5125_v63, %v3263_v15 }
0x20af   :  { %v3265_v60 = vsel %vm3264_vm14, %v3260_v56, inf }
0x20b0   :  { %3266 = vmin.xlane.f32.xlu0 %v3265_v60 }
0x20db   :  { %s4003_s29 = spop %4002 }
0x20dc   :  { %s4005_s30 = spop %4004 }
0x20dd   :  { %s3143_s5 = smax.f32 %s4181_s21, %s4005_s30 }
0x20de   :  { %v3144_v16 = vstv %s3143_s5 }
0x20df   :  { %4147 = vrcp.f32 %v3144_v16 }
0x20e9   :  { %v4148_v21 = vpop.eup %4147 }
0x20ea   :  { %4006 = vpush %v4148_v21 }
0x211b   :  { %s4007_s19 = spop %4006 }
0x211c   :  { %s3147_s12 = smul.f32 %s4007_s19, %s4003_s29 }
0x211e   :  { %v3148_v61 = vstv %s3147_s12 }
0x211f   :  { %3150 = vst.msk [vmem:[#allocation3] sm:$0x1] %vm3149_vm15, %v3148_v61 }
0x2120   :  { %4161 = shalt.err (!%p4158_p4)
}
0x2121   :  { %s4162_s22 = scalar_lea.hbm %s5202_s17, 16 }
0x2122   :  { %p4163_p5 = scmp.ne.s32.totalorder %s5202_s17, %s4162_s22  ;;  %p4166_p6 = scmp.lt.u32.totalorder %s4162_s22, %s5202_s17 }
0x2124   :  { %p4168_p7 = pnand %p4166_p6, %p4163_p5 }
0x2126   :  { %4171 = shalt.err (!%p4168_p7)
}
0x2127   :  { %3304 = dma.vmem_to_hbm [thread:$0]  %s3302_s0, 16, %s5202_s17, [#allocation4]   ;;  %v3179_v24 = vcvt.f32.s32 %v5134_v22  ;;  %v3209_v54 = vcvt.f32.s32 %v5142_v36  ;;  %v3239_v59 = vcvt.f32.s32 %v3233_v42  ;;  %v3269_v3 = vcvt.f32.s32 %v3263_v15 }
0x2129   :  { %v3180_v48 = vshll.u32 %v3179_v24, 16  ;;  %v3210_v46 = vshll.u32 %v3209_v54, 16  ;;  %v3240_v29 = vshll.u32 %v3239_v59, 16  ;;  %v3270_v7 = vshll.u32 %v3269_v3, 16 }
0x2131   :  { %v3177_v62 = vpop.xlane.xlu0 %3176 }
0x2132   :  { %v3178_v57 = vcvt.f32.s32 %v3177_v62 }
0x2134   :  { %v3181_v52 = vadd.s32 %v3180_v48, %v3178_v57 }
0x2135   :  { %v3207_v18 = vpop.xlane.xlu0 %3206 }
0x2136   :  { %3287 = vst.msk [vmem:[%s5203_s18] sm:$0xff] %vm3078_vm7, %v3181_v52  ;;  %v3208_v26 = vcvt.f32.s32 %v3207_v18 }
0x2138   :  { %v3211_v1 = vadd.s32 %v3210_v46, %v3208_v26 }
0x2139   :  { %v3237_v63 = vpop.xlane.xlu0 %3236 }
0x213a   :  { %3289 = vst.msk [vmem:[%s5203_s18 + $0x10] sm:$0xff] %vm3078_vm7, %v3211_v1  ;;  %v3238_v30 = vcvt.f32.s32 %v3237_v63 }
0x213c   :  { %v3241_v5 = vadd.s32 %v3240_v29, %v3238_v30 }
0x213d   :  { %v3267_v6 = vpop.xlane.xlu0 %3266 }
0x213e   :  { %3291 = vst.msk [vmem:[%s5203_s18 + $0x20] sm:$0xff] %vm3078_vm7, %v3241_v5  ;;  %v3268_v39 = vcvt.f32.s32 %v3267_v6 }
0x2140   :  { %v3271_v8 = vadd.s32 %v3270_v7, %v3268_v39 }
0x2142   :  { %3293 = vst.msk [vmem:[%s5203_s18 + $0x30] sm:$0xff] %vm3078_vm7, %v3271_v8 }
0x2143   :  { %4172 = dma.done.wait [#allocation4], 16  }
0x2144   :  { %4173 = vsyncadd [#allocation4], 4294967280 }
0x2145   :  { %3312 = vsyncpa [#allocation4], 1 }

</bundles_post_ra>
